<compile_context>
chip_gen: v7x
topology: tpu7x:2x2x1
jax: 0.10.0
libtpu: 0.0.40
codegen_flags: <defaults>
</compile_context>

<pallas_src>
import functools

import jax
import jax.numpy as jnp
import numpy as np
from jax.experimental import pallas as pl
from jax.experimental.pallas import tpu as pltpu

EPS = 1e-5              # CLIP LayerNorm eps
NEG_INF = -1e30         # finite "minus infinity" for the causal mask
COMPUTE_DTYPE = jnp.bfloat16   # MXU input dtype (accumulation stays f32)


def _ln(x, g, b):
    # Fused-moment LayerNorm: var = E[x^2] - mu^2 (one reduction pass less).
    x = x.astype(jnp.float32)
    mu = jnp.mean(x, axis=-1, keepdims=True)
    var = jnp.mean(x * x, axis=-1, keepdims=True) - mu * mu
    return (x - mu) * jax.lax.rsqrt(var + EPS) * g + b


# ----------------------------------------------------------------------------
# Fused kernel: all residual blocks + ln_final + EOT gather + projection
# ----------------------------------------------------------------------------
def _text_encoder_kernel(eot_ref,
                         x_ref,
                         ln1g_ref, ln1b_ref, wqkv_ref, bqkv_ref, wo_ref, bo_ref,
                         ln2g_ref, ln2b_ref, w1_ref, b1_ref, w2_ref, b2_ref,
                         lnfg_ref, lnfb_ref, proj_ref, pos_ref,
                         o_ref, x_res, attn_scr,
                         *, num_heads):
    b = pl.program_id(0)
    layer = pl.program_id(1)
    n_layers = pl.num_programs(1)

    B, L, D = x_ref.shape          # batch tile, seq len, width
    M = B * L
    H = num_heads
    dh = D // H

    # Layer 0: fuse the positional-embedding add and load into the resident
    # f32 activation scratch (x arrives in bf16).
    @pl.when(layer == 0)
    def _():
        x0 = x_ref[...].astype(jnp.float32) + pos_ref[...]
        x_res[...] = x0.reshape(M, D)

    x = x_res[...]                                              # (M, D) f32

    # Causal additive mask, built once per step as a single (L, L) tensor and
    # broadcast against the (B, L, L) scores (no (B, L, L) materialization).
    row = jax.lax.broadcasted_iota(jnp.int32, (L, L), 0)
    col = jax.lax.broadcasted_iota(jnp.int32, (L, L), 1)
    mask_bias = jnp.where(col <= row, 0.0, NEG_INF).astype(jnp.float32)

    # ---- ln_1 + multi-head causal self-attention ----
    xn = _ln(x, ln1g_ref[0], ln1b_ref[0]).astype(COMPUTE_DTYPE)
    # 1/sqrt(dh) is pre-folded into the Q rows of wqkv/bqkv (host side).
    qkv = (jnp.dot(xn, wqkv_ref[0], preferred_element_type=jnp.float32)
           + bqkv_ref[0]).astype(COMPUTE_DTYPE)                   # (M, 3D) bf16

    for h in range(H):
        q = qkv[:, h * dh:(h + 1) * dh].reshape(B, L, dh)
        k = qkv[:, D + h * dh:D + (h + 1) * dh].reshape(B, L, dh)
        v = qkv[:, 2 * D + h * dh:2 * D + (h + 1) * dh].reshape(B, L, dh)
        s = jnp.einsum("bqd,bkd->bqk", q, k,
                       preferred_element_type=jnp.float32)        # (B, L, L)
        s = s + mask_bias
        s = s - jnp.max(s, axis=-1, keepdims=True)
        p = jnp.exp(s)
        p = p * pl.reciprocal(jnp.sum(p, axis=-1, keepdims=True), approx=True)
        o = jnp.einsum("bqk,bkd->bqd", p.astype(COMPUTE_DTYPE), v,
                       preferred_element_type=jnp.float32)        # (B, L, dh)
        # Write each head straight into the (M, D) scratch (no concatenate,
        # only one head output live at a time).
        attn_scr[:, h * dh:(h + 1) * dh] = o.reshape(M, dh)

    attn = jnp.dot(attn_scr[...].astype(COMPUTE_DTYPE), wo_ref[0],
                   preferred_element_type=jnp.float32) + bo_ref[0]
    x = x + attn

    # ---- ln_2 + MLP (Linear -> QuickGELU -> Linear), QuickGELU in bf16 ----
    xn2 = _ln(x, ln2g_ref[0], ln2b_ref[0]).astype(COMPUTE_DTYPE)
    h1 = (jnp.dot(xn2, w1_ref[0], preferred_element_type=jnp.float32)
          + b1_ref[0]).astype(COMPUTE_DTYPE)
    h1 = h1 * jax.nn.sigmoid(1.702 * h1)                          # QuickGELU
    h2 = jnp.dot(h1, w2_ref[0], preferred_element_type=jnp.float32) + b2_ref[0]
    x = x + h2

    x_res[...] = x

    # Last layer: ln_final on the EOT rows only, then text projection.
    @pl.when(layer == n_layers - 1)
    def _():
        rows = []
        for e in range(B):
            idx = eot_ref[b * B + e]                      # EOT position in [0, L)
            rows.append(x_res[pl.ds(e * L + idx, 1), :])  # (1, D)
        sel = jnp.concatenate(rows, axis=0)               # (B, D)
        sel = _ln(sel, lnfg_ref[...], lnfb_ref[...])
        out = jnp.dot(sel.astype(COMPUTE_DTYPE), proj_ref[...],
                      preferred_element_type=jnp.float32)  # (B, E)
        o_ref[...] = out.astype(o_ref.dtype)


# ----------------------------------------------------------------------------
# Host-side packing: stack per-layer weights, pre-transpose, fold attn scale,
# cast matmul weights to bf16.
# ----------------------------------------------------------------------------
def pack_params(params, compute_dtype=COMPUTE_DTYPE):
    layers = params["layers"]
    num_heads = params["num_heads"]
    D = layers[0]["wqkv"].shape[1]
    dh = D // num_heads
    scale = 1.0 / float(np.sqrt(dh))

    def stack(key):
        return jnp.stack([lp[key] for lp in layers], axis=0)

    def vec(key):                     # (n_layers, X) -> (n_layers, 1, X), f32
        return stack(key)[:, None, :].astype(jnp.float32)

    def mat_t(key):                   # (n_layers, out, in) -> (n_layers, in, out)
        return jnp.swapaxes(stack(key), 1, 2).astype(compute_dtype)

    # Fold the 1/sqrt(dh) attention scale into the Q rows of wqkv / bqkv.
    wqkv = stack("wqkv").astype(jnp.float32)                 # (n_layers, 3D, D)
    bqkv = stack("bqkv").astype(jnp.float32)                 # (n_layers, 3D)
    row_scale = jnp.concatenate([jnp.full((D,), scale, jnp.float32),
                                 jnp.ones((2 * D,), jnp.float32)])
    wqkv = wqkv * row_scale[None, :, None]
    bqkv = bqkv * row_scale[None, :]

    return dict(
        num_heads=num_heads,
        pos_emb=params["pos_emb"].astype(jnp.float32),
        ln1_g=vec("ln1_g"), ln1_b=vec("ln1_b"),
        wqkv=jnp.swapaxes(wqkv, 1, 2).astype(compute_dtype),
        bqkv=bqkv[:, None, :].astype(jnp.float32),
        wo=mat_t("wo"), bo=vec("bo"),
        ln2_g=vec("ln2_g"), ln2_b=vec("ln2_b"),
        w1=mat_t("w1"), b1=vec("b1"),
        w2=mat_t("w2"), b2=vec("b2"),
        lnf_g=params["lnf_g"][None, :].astype(jnp.float32),
        lnf_b=params["lnf_b"][None, :].astype(jnp.float32),
        proj=params["proj"].astype(compute_dtype),
    )


# ----------------------------------------------------------------------------
# Generation-aware VMEM / tile sizing
# ----------------------------------------------------------------------------
def _tpu_vmem_bytes():
    try:
        return int(pltpu.get_tpu_info().vmem_capacity_bytes)
    except Exception:
        pass
    try:
        kind = jax.devices()[0].device_kind.lower()
        if any(t in kind for t in ("v4", "v5", "v6")):
            return 128 << 20
    except Exception:
        pass
    return 64 << 20          # conservative (v7x-class)


def _pick_b_tile(N, vmem_bytes):
    # Bigger tiles amortize per-batch-tile weight re-fetch; cap by VMEM class.
    cap = 16 if vmem_bytes >= (96 << 20) else 8
    valid = [t for t in (16, 8, 4, 2, 1)
             if t <= cap and N % t == 0 and (t % 8 == 0 or t == N)]
    if not valid:
        return N                               # single full tile fallback
    multi = [t for t in valid if N // t >= 2]  # keep both v7x TCs busy
    return multi[0] if multi else valid[0]


# ----------------------------------------------------------------------------
# Full TextEncoder forward (single pallas_call)
# ----------------------------------------------------------------------------
def text_encoder_forward(prompts, tokenized_prompts, packed, *, b_tile=None):
    N, L, D = prompts.shape
    E = packed["proj"].shape[-1]
    n_layers = packed["wqkv"].shape[0]
    H = packed["num_heads"]

    vmem_phys = _tpu_vmem_bytes()
    if b_tile is None:
        b_tile = _pick_b_tile(N, vmem_phys)
    assert N % b_tile == 0, (N, b_tile)

    # bf16 activations into the kernel; +pos_emb and f32 accumulation happen
    # in the layer-0 branch.  Token argmax is trivial glue left to XLA.
    x0 = prompts.astype(COMPUTE_DTYPE)
    eot = jnp.argmax(tokenized_prompts, axis=-1).astype(jnp.int32)

    per_layer_keys = ("ln1_g", "ln1_b", "wqkv", "bqkv", "wo", "bo",
                      "ln2_g", "ln2_b", "w1", "b1", "w2", "b2")
    per_layer = [packed[k] for k in per_layer_keys]
    consts = [packed["lnf_g"], packed["lnf_b"], packed["proj"],
              packed["pos_emb"]]

    def layer_spec(a):
        nd = a.ndim
        return pl.BlockSpec((1,) + a.shape[1:],
                            lambda bb, ll, eot_ref, _n=nd: (ll,) + (0,) * (_n - 1))

    def const_spec(a):
        nd = a.ndim
        return pl.BlockSpec(a.shape, lambda bb, ll, eot_ref, _n=nd: (0,) * _n)

    in_specs = ([pl.BlockSpec((b_tile, L, D), lambda bb, ll, eot_ref: (bb, 0, 0))]
                + [layer_spec(a) for a in per_layer]
                + [const_spec(a) for a in consts])

    grid = (N // b_tile, n_layers)
    grid_spec = pltpu.PrefetchScalarGridSpec(
        num_scalar_prefetch=1,
        grid=grid,
        in_specs=in_specs,
        out_specs=pl.BlockSpec((b_tile, E), lambda bb, ll, eot_ref: (bb, 0)),
        scratch_shapes=[pltpu.VMEM((b_tile * L, D), jnp.float32),   # resident x
                        pltpu.VMEM((b_tile * L, D), jnp.float32)],  # attn out
    )

    # Advisory cost estimate so XLA schedules surrounding ops sensibly.
    M = b_tile * L
    dh = D // H
    steps = grid[0] * grid[1]
    flops_step = 2 * M * D * (3 * D + D + 8 * D) + 4 * b_tile * H * L * L * dh
    trans_step = M * 4 * D + b_tile * H * L * L
    wbytes_step = sum(int(np.prod(a.shape[1:])) * a.dtype.itemsize
                      for a in per_layer)
    cost = pl.CostEstimate(
        flops=int(steps * flops_step),
        transcendentals=int(steps * trans_step),
        bytes_accessed=int(steps * wbytes_step
                           + x0.size * x0.dtype.itemsize + N * E * 4))

    vmem_limit = int(min(vmem_phys - (8 << 20), int(vmem_phys * 0.82)))

    return pl.pallas_call(
        functools.partial(_text_encoder_kernel, num_heads=H),
        out_shape=jax.ShapeDtypeStruct((N, E), jnp.float32),
        grid_spec=grid_spec,
        compiler_params=pltpu.CompilerParams(
            dimension_semantics=("parallel", "arbitrary"),
            vmem_limit_bytes=vmem_limit),
        cost_estimate=cost,
    )(eot, x0, *per_layer, *consts)


# ----------------------------------------------------------------------------
# Pure-JAX reference (f32, torch-layout weights) for the correctness check
# ----------------------------------------------------------------------------
def reference_forward(prompts, tokenized_prompts, params):
    x = prompts + params["pos_emb"]
    H = params["num_heads"]
    N, L, D = x.shape
    dh = D // H
    mask = jnp.triu(jnp.full((L, L), -jnp.inf, dtype=jnp.float32), k=1)
    for p in params["layers"]:
        xn = _ln(x, p["ln1_g"], p["ln1_b"])
        qkv = xn @ p["wqkv"].T + p["bqkv"]
        q, k, v = qkv[..., :D], qkv[..., D:2 * D], qkv[..., 2 * D:]

        def split(t):
            return t.reshape(N, L, H, dh).transpose(0, 2, 1, 3)

        qh, kh, vh = split(q), split(k), split(v)
        s = jnp.einsum("bhqd,bhkd->bhqk", qh / np.sqrt(dh), kh) + mask
        a = jax.nn.softmax(s, axis=-1)
        o = jnp.einsum("bhqk,bhkd->bhqd", a, vh).transpose(0, 2, 1, 3)
        x = x + (o.reshape(N, L, D) @ p["wo"].T + p["bo"])

        xn2 = _ln(x, p["ln2_g"], p["ln2_b"])
        h1 = xn2 @ p["w1"].T + p["b1"]
        h1 = h1 * jax.nn.sigmoid(1.702 * h1)
        x = x + (h1 @ p["w2"].T + p["b2"])

    xf = _ln(x, params["lnf_g"], params["lnf_b"])
    eot = jnp.argmax(tokenized_prompts, axis=-1)
    sel = xf[jnp.arange(xf.shape[0]), eot]
    return sel @ params["proj"]


# ----------------------------------------------------------------------------
# Deterministic synthetic parameters + example run
# ----------------------------------------------------------------------------
def init_params(key, L, D, H, E, n_layers):
    keys = iter(jax.random.split(key, 8 + 16 * n_layers))

    def nrm(shape, s=0.02):
        return (s * jax.random.normal(next(keys), shape)).astype(jnp.float32)

    layers = []
    for _ in range(n_layers):
        layers.append(dict(
            ln1_g=1.0 + nrm((D,), 0.1), ln1_b=nrm((D,), 0.1),
            wqkv=nrm((3 * D, D)), bqkv=nrm((3 * D,), 0.01),
            wo=nrm((D, D)), bo=nrm((D,), 0.01),
            ln2_g=1.0 + nrm((D,), 0.1), ln2_b=nrm((D,), 0.1),
            w1=nrm((4 * D, D)), b1=nrm((4 * D,), 0.01),
            w2=nrm((D, 4 * D)), b2=nrm((D,), 0.01),
        ))
    return dict(
        num_heads=H,
        pos_emb=nrm((L, D), 0.02),
        layers=layers,
        lnf_g=1.0 + nrm((D,), 0.1),
        lnf_b=nrm((D,), 0.1),
        proj=nrm((D, E)),
    )


if __name__ == "__main__":
    N, L, D, H, E, LAYERS = 2, 8, 32, 4, 16, 2

    root = jax.random.PRNGKey(0)
    k_param, k_prompt, k_tok = jax.random.split(root, 3)

    params = init_params(k_param, L, D, H, E, LAYERS)
    prompts = (0.5 * jax.random.normal(k_prompt, (N, L, D))).astype(jnp.float32)
    tokenized_prompts = jax.random.randint(k_tok, (N, L), 0, 1000,
                                           dtype=jnp.int32)

    packed = pack_params(params)
    out = text_encoder_forward(prompts, tokenized_prompts, packed)
    out = jax.block_until_ready(out)

    ref = jax.block_until_ready(
        reference_forward(prompts, tokenized_prompts, params))

    assert out.shape == (N, E), out.shape
    # bf16 matmul inputs / bf16 QuickGELU (f32 accumulation) vs f32 reference.
    np.testing.assert_allclose(np.asarray(out), np.asarray(ref),
                               rtol=2e-2, atol=1e-2)
    print("KERNEL_OK")
</pallas_src>

<mosaic_0001>
module attributes {stable_mosaic.version = 11 : i64} {
  func.func @_text_encoder_kernel(%arg0: i32, %arg1: i32, %arg2: memref<2xi32, #tpu.memory_space<smem>>, %arg3: memref<2x8x32xbf16, #tpu.memory_space<vmem>>, %arg4: memref<1x1x32xf32, #tpu.memory_space<vmem>>, %arg5: memref<1x1x32xf32, #tpu.memory_space<vmem>>, %arg6: memref<1x32x96xbf16, #tpu.memory_space<vmem>>, %arg7: memref<1x1x96xf32, #tpu.memory_space<vmem>>, %arg8: memref<1x32x32xbf16, #tpu.memory_space<vmem>>, %arg9: memref<1x1x32xf32, #tpu.memory_space<vmem>>, %arg10: memref<1x1x32xf32, #tpu.memory_space<vmem>>, %arg11: memref<1x1x32xf32, #tpu.memory_space<vmem>>, %arg12: memref<1x32x128xbf16, #tpu.memory_space<vmem>>, %arg13: memref<1x1x128xf32, #tpu.memory_space<vmem>>, %arg14: memref<1x128x32xbf16, #tpu.memory_space<vmem>>, %arg15: memref<1x1x32xf32, #tpu.memory_space<vmem>>, %arg16: memref<1x32xf32, #tpu.memory_space<vmem>>, %arg17: memref<1x32xf32, #tpu.memory_space<vmem>>, %arg18: memref<32x16xbf16, #tpu.memory_space<vmem>>, %arg19: memref<8x32xf32, #tpu.memory_space<vmem>>, %arg20: memref<2x16xf32, #tpu.memory_space<vmem>>, %arg21: memref<16x32xf32, #tpu.memory_space<vmem>>, %arg22: memref<16x32xf32, #tpu.memory_space<vmem>>) attributes {dimension_semantics = [#tpu.dimension_semantics<parallel>, #tpu.dimension_semantics<arbitrary>], iteration_bounds = array<i64: 1, 2>, scalar_prefetch = 1 : i64, scratch_operands = 2 : i64, tpu.core_type = #tpu.core_type<tc>, window_params = [{transform_indices = @transform_0, window_bounds = array<i64: 2, 8, 32>}, {transform_indices = @transform_1, window_bounds = array<i64: 1, 1, 32>}, {transform_indices = @transform_2, window_bounds = array<i64: 1, 1, 32>}, {transform_indices = @transform_3, window_bounds = array<i64: 1, 32, 96>}, {transform_indices = @transform_4, window_bounds = array<i64: 1, 1, 96>}, {transform_indices = @transform_5, window_bounds = array<i64: 1, 32, 32>}, {transform_indices = @transform_6, window_bounds = array<i64: 1, 1, 32>}, {transform_indices = @transform_7, window_bounds = array<i64: 1, 1, 32>}, {transform_indices = @transform_8, window_bounds = array<i64: 1, 1, 32>}, {transform_indices = @transform_9, window_bounds = array<i64: 1, 32, 128>}, {transform_indices = @transform_10, window_bounds = array<i64: 1, 1, 128>}, {transform_indices = @transform_11, window_bounds = array<i64: 1, 128, 32>}, {transform_indices = @transform_12, window_bounds = array<i64: 1, 1, 32>}, {pipeline_mode = #tpu.pipeline_mode<synchronous>, transform_indices = @transform_13, window_bounds = array<i64: 1, 32>}, {pipeline_mode = #tpu.pipeline_mode<synchronous>, transform_indices = @transform_14, window_bounds = array<i64: 1, 32>}, {pipeline_mode = #tpu.pipeline_mode<synchronous>, transform_indices = @transform_15, window_bounds = array<i64: 32, 16>}, {pipeline_mode = #tpu.pipeline_mode<synchronous>, transform_indices = @transform_16, window_bounds = array<i64: 8, 32>}, {transform_indices = @transform_17, window_bounds = array<i64: 2, 16>}]} {
    %c0_i32 = arith.constant 0 : i32
    %0 = arith.cmpi eq, %arg1, %c0_i32 : i32
    %1 = arith.extui %0 : i1 to i32
    %c0_i32_0 = arith.constant 0 : i32
    %2 = arith.cmpi ne, %1, %c0_i32_0 : i32
    scf.if %2 {
      %c0_81 = arith.constant 0 : index
      %c0_82 = arith.constant 0 : index
      %c0_83 = arith.constant 0 : index
      %206 = vector.load %arg3[%c0_81, %c0_82, %c0_83] : memref<2x8x32xbf16, #tpu.memory_space<vmem>>, vector<2x8x32xbf16>
      %207 = arith.extf %206 : vector<2x8x32xbf16> to vector<2x8x32xf32>
      %c0_84 = arith.constant 0 : index
      %c0_85 = arith.constant 0 : index
      %208 = vector.load %arg19[%c0_84, %c0_85] : memref<8x32xf32, #tpu.memory_space<vmem>>, vector<8x32xf32>
      %209 = vector.shape_cast %208 : vector<8x32xf32> to vector<1x8x32xf32>
      %210 = vector.broadcast %209 : vector<1x8x32xf32> to vector<2x8x32xf32>
      %211 = arith.addf %207, %210 : vector<2x8x32xf32>
      %212 = vector.shape_cast %211 : vector<2x8x32xf32> to vector<16x32xf32>
      %c0_86 = arith.constant 0 : index
      %c0_87 = arith.constant 0 : index
      %213 = vector.load %arg21[%c0_86, %c0_87] : memref<16x32xf32, #tpu.memory_space<vmem>>, vector<16x32xf32>
      tpu.vector_store %arg21[%c0_86, %c0_87], %212 {strides = array<i32>} : memref<16x32xf32, #tpu.memory_space<vmem>>, vector<16x32xf32>,
    } else {
    }
    %c0 = arith.constant 0 : index
    %c0_1 = arith.constant 0 : index
    %3 = vector.load %arg21[%c0, %c0_1] : memref<16x32xf32, #tpu.memory_space<vmem>>, vector<16x32xf32>
    %4 = tpu.iota {dimensions = array<i32: 0>} : vector<8x8xi32>
    %5 = tpu.iota {dimensions = array<i32: 1>} : vector<8x8xi32>
    %6 = arith.cmpi sle, %5, %4 : vector<8x8xi32>
    %cst = arith.constant 0.000000e+00 : f32
    %cst_2 = arith.constant -1.000000e+30 : f32
    %7 = vector.broadcast %cst : f32 to vector<8x8xf32>
    %8 = vector.broadcast %cst_2 : f32 to vector<8x8xf32>
    %9 = arith.select %6, %7, %8 : vector<8x8xi1>, vector<8x8xf32>
    %c0_3 = arith.constant 0 : index
    %c0_4 = arith.constant 0 : index
    %c0_5 = arith.constant 0 : index
    %10 = vector.load %arg4[%c0_3, %c0_4, %c0_5] : memref<1x1x32xf32, #tpu.memory_space<vmem>>, vector<1x1x32xf32>
    %11 = vector.shape_cast %10 : vector<1x1x32xf32> to vector<1x32xf32>
    %c0_6 = arith.constant 0 : index
    %c0_7 = arith.constant 0 : index
    %c0_8 = arith.constant 0 : index
    %12 = vector.load %arg5[%c0_6, %c0_7, %c0_8] : memref<1x1x32xf32, #tpu.memory_space<vmem>>, vector<1x1x32xf32>
    %13 = vector.shape_cast %12 : vector<1x1x32xf32> to vector<1x32xf32>
    %cst_9 = arith.constant dense<0.000000e+00> : vector<16xf32>
    %14 = vector.multi_reduction <add>, %3, %cst_9 [1] : vector<16x32xf32> to vector<16xf32>
    %15 = vector.shape_cast %14 : vector<16xf32> to vector<16x1xf32>
    %cst_10 = arith.constant 3.200000e+01 : f32
    %16 = vector.broadcast %cst_10 : f32 to vector<16x1xf32>
    %17 = arith.divf %15, %16 : vector<16x1xf32>
    %18 = arith.mulf %3, %3 : vector<16x32xf32>
    %cst_11 = arith.constant dense<0.000000e+00> : vector<16xf32>
    %19 = vector.multi_reduction <add>, %18, %cst_11 [1] : vector<16x32xf32> to vector<16xf32>
    %20 = vector.shape_cast %19 : vector<16xf32> to vector<16x1xf32>
    %cst_12 = arith.constant 3.200000e+01 : f32
    %21 = vector.broadcast %cst_12 : f32 to vector<16x1xf32>
    %22 = arith.divf %20, %21 : vector<16x1xf32>
    %23 = arith.mulf %17, %17 : vector<16x1xf32>
    %24 = arith.subf %22, %23 : vector<16x1xf32>
    %25 = vector.broadcast %17 : vector<16x1xf32> to vector<16x32xf32>
    %26 = arith.subf %3, %25 : vector<16x32xf32>
    %cst_13 = arith.constant 9.99999974E-6 : f32
    %27 = vector.broadcast %cst_13 : f32 to vector<16x1xf32>
    %28 = arith.addf %24, %27 : vector<16x1xf32>
    %29 = math.rsqrt %28 : vector<16x1xf32>
    %30 = vector.broadcast %29 : vector<16x1xf32> to vector<16x32xf32>
    %31 = arith.mulf %26, %30 : vector<16x32xf32>
    %32 = vector.broadcast %11 : vector<1x32xf32> to vector<16x32xf32>
    %33 = arith.mulf %31, %32 : vector<16x32xf32>
    %34 = vector.broadcast %13 : vector<1x32xf32> to vector<16x32xf32>
    %35 = arith.addf %33, %34 : vector<16x32xf32>
    %36 = arith.truncf %35 : vector<16x32xf32> to vector<16x32xbf16>
    %c0_14 = arith.constant 0 : index
    %c0_15 = arith.constant 0 : index
    %c0_16 = arith.constant 0 : index
    %37 = vector.load %arg6[%c0_14, %c0_15, %c0_16] : memref<1x32x96xbf16, #tpu.memory_space<vmem>>, vector<1x32x96xbf16>
    %38 = vector.shape_cast %37 : vector<1x32x96xbf16> to vector<32x96xbf16>
    %cst_17 = arith.constant dense<0.000000e+00> : vector<16x96xf32>
    %39 = tpu.matmul %36, %38, %cst_17 {dimension_numbers = #tpu.dot_dimension_numbers<[1], [0], [0], [1], [0, 0, 1, 1], [], []>} : vector<16x32xbf16>, vector<32x96xbf16>, vector<16x96xf32> -> vector<16x96xf32>
    %c0_18 = arith.constant 0 : index
    %c0_19 = arith.constant 0 : index
    %c0_20 = arith.constant 0 : index
    %40 = vector.load %arg7[%c0_18, %c0_19, %c0_20] : memref<1x1x96xf32, #tpu.memory_space<vmem>>, vector<1x1x96xf32>
    %41 = vector.shape_cast %40 : vector<1x1x96xf32> to vector<1x96xf32>
    %42 = vector.broadcast %41 : vector<1x96xf32> to vector<16x96xf32>
    %43 = arith.addf %39, %42 : vector<16x96xf32>
    %44 = arith.truncf %43 : vector<16x96xf32> to vector<16x96xbf16>
    %45 = vector.extract_strided_slice %44 {offsets = [0, 0], sizes = [16, 8], strides = [1, 1]} : vector<16x96xbf16> to vector<16x8xbf16>
    %46 = vector.shape_cast %45 : vector<16x8xbf16> to vector<2x8x8xbf16>
    %47 = vector.extract_strided_slice %44 {offsets = [0, 32], sizes = [16, 8], strides = [1, 1]} : vector<16x96xbf16> to vector<16x8xbf16>
    %48 = vector.shape_cast %47 : vector<16x8xbf16> to vector<2x8x8xbf16>
    %49 = vector.extract_strided_slice %44 {offsets = [0, 64], sizes = [16, 8], strides = [1, 1]} : vector<16x96xbf16> to vector<16x8xbf16>
    %50 = vector.shape_cast %49 : vector<16x8xbf16> to vector<2x8x8xbf16>
    "tpu.trace_start"() <{level = 10 : i32, message = "bqd,bkd->bqk"}> : () -> ()
    %cst_21 = arith.constant dense<0.000000e+00> : vector<2x8x8xf32>
    %51 = tpu.matmul %46, %48, %cst_21 {dimension_numbers = #tpu.dot_dimension_numbers<[2], [2], [1], [1], [0, 0, 0, 1, 1, 1], [0], [0]>} : vector<2x8x8xbf16>, vector<2x8x8xbf16>, vector<2x8x8xf32> -> vector<2x8x8xf32>
    "tpu.trace_stop"() : () -> ()
    %52 = vector.shape_cast %9 : vector<8x8xf32> to vector<1x8x8xf32>
    %53 = vector.broadcast %52 : vector<1x8x8xf32> to vector<2x8x8xf32>
    %54 = arith.addf %51, %53 : vector<2x8x8xf32>
    %cst_22 = arith.constant dense<0xFF800000> : vector<2x8xf32>
    %55 = vector.multi_reduction <maximumf>, %54, %cst_22 [2] : vector<2x8x8xf32> to vector<2x8xf32>
    %56 = vector.shape_cast %55 : vector<2x8xf32> to vector<2x8x1xf32>
    %57 = vector.broadcast %56 : vector<2x8x1xf32> to vector<2x8x8xf32>
    %58 = arith.subf %54, %57 : vector<2x8x8xf32>
    %59 = math.exp %58 : vector<2x8x8xf32>
    %cst_23 = arith.constant dense<0.000000e+00> : vector<2x8xf32>
    %60 = vector.multi_reduction <add>, %59, %cst_23 [2] : vector<2x8x8xf32> to vector<2x8xf32>
    %61 = vector.shape_cast %60 : vector<2x8xf32> to vector<2x8x1xf32>
    %62 = tpu.reciprocal %61 {approx = true} : vector<2x8x1xf32> -> vector<2x8x1xf32>
    %63 = vector.broadcast %62 : vector<2x8x1xf32> to vector<2x8x8xf32>
    %64 = arith.mulf %59, %63 : vector<2x8x8xf32>
    %65 = arith.truncf %64 : vector<2x8x8xf32> to vector<2x8x8xbf16>
    "tpu.trace_start"() <{level = 10 : i32, message = "bqk,bkd->bqd"}> : () -> ()
    %cst_24 = arith.constant dense<0.000000e+00> : vector<2x8x8xf32>
    %66 = tpu.matmul %65, %50, %cst_24 {dimension_numbers = #tpu.dot_dimension_numbers<[2], [1], [1], [2], [0, 0, 0, 1, 1, 2], [0], [0]>} : vector<2x8x8xbf16>, vector<2x8x8xbf16>, vector<2x8x8xf32> -> vector<2x8x8xf32>
    "tpu.trace_stop"() : () -> ()
    %67 = vector.shape_cast %66 : vector<2x8x8xf32> to vector<16x8xf32>
    %c0_25 = arith.constant 0 : index
    %c0_26 = arith.constant 0 : index
    %68 = vector.load %arg22[%c0_25, %c0_26] : memref<16x32xf32, #tpu.memory_space<vmem>>, vector<16x8xf32>
    tpu.vector_store %arg22[%c0_25, %c0_26], %67 {strides = array<i32>} : memref<16x32xf32, #tpu.memory_space<vmem>>, vector<16x8xf32>,
    %69 = vector.extract_strided_slice %44 {offsets = [0, 8], sizes = [16, 8], strides = [1, 1]} : vector<16x96xbf16> to vector<16x8xbf16>
    %70 = vector.shape_cast %69 : vector<16x8xbf16> to vector<2x8x8xbf16>
    %71 = vector.extract_strided_slice %44 {offsets = [0, 40], sizes = [16, 8], strides = [1, 1]} : vector<16x96xbf16> to vector<16x8xbf16>
    %72 = vector.shape_cast %71 : vector<16x8xbf16> to vector<2x8x8xbf16>
    %73 = vector.extract_strided_slice %44 {offsets = [0, 72], sizes = [16, 8], strides = [1, 1]} : vector<16x96xbf16> to vector<16x8xbf16>
    %74 = vector.shape_cast %73 : vector<16x8xbf16> to vector<2x8x8xbf16>
    "tpu.trace_start"() <{level = 10 : i32, message = "bqd,bkd->bqk"}> : () -> ()
    %cst_27 = arith.constant dense<0.000000e+00> : vector<2x8x8xf32>
    %75 = tpu.matmul %70, %72, %cst_27 {dimension_numbers = #tpu.dot_dimension_numbers<[2], [2], [1], [1], [0, 0, 0, 1, 1, 1], [0], [0]>} : vector<2x8x8xbf16>, vector<2x8x8xbf16>, vector<2x8x8xf32> -> vector<2x8x8xf32>
    "tpu.trace_stop"() : () -> ()
    %76 = vector.shape_cast %9 : vector<8x8xf32> to vector<1x8x8xf32>
    %77 = vector.broadcast %76 : vector<1x8x8xf32> to vector<2x8x8xf32>
    %78 = arith.addf %75, %77 : vector<2x8x8xf32>
    %cst_28 = arith.constant dense<0xFF800000> : vector<2x8xf32>
    %79 = vector.multi_reduction <maximumf>, %78, %cst_28 [2] : vector<2x8x8xf32> to vector<2x8xf32>
    %80 = vector.shape_cast %79 : vector<2x8xf32> to vector<2x8x1xf32>
    %81 = vector.broadcast %80 : vector<2x8x1xf32> to vector<2x8x8xf32>
    %82 = arith.subf %78, %81 : vector<2x8x8xf32>
    %83 = math.exp %82 : vector<2x8x8xf32>
    %cst_29 = arith.constant dense<0.000000e+00> : vector<2x8xf32>
    %84 = vector.multi_reduction <add>, %83, %cst_29 [2] : vector<2x8x8xf32> to vector<2x8xf32>
    %85 = vector.shape_cast %84 : vector<2x8xf32> to vector<2x8x1xf32>
    %86 = tpu.reciprocal %85 {approx = true} : vector<2x8x1xf32> -> vector<2x8x1xf32>
    %87 = vector.broadcast %86 : vector<2x8x1xf32> to vector<2x8x8xf32>
    %88 = arith.mulf %83, %87 : vector<2x8x8xf32>
    %89 = arith.truncf %88 : vector<2x8x8xf32> to vector<2x8x8xbf16>
    "tpu.trace_start"() <{level = 10 : i32, message = "bqk,bkd->bqd"}> : () -> ()
    %cst_30 = arith.constant dense<0.000000e+00> : vector<2x8x8xf32>
    %90 = tpu.matmul %89, %74, %cst_30 {dimension_numbers = #tpu.dot_dimension_numbers<[2], [1], [1], [2], [0, 0, 0, 1, 1, 2], [0], [0]>} : vector<2x8x8xbf16>, vector<2x8x8xbf16>, vector<2x8x8xf32> -> vector<2x8x8xf32>
    "tpu.trace_stop"() : () -> ()
    %91 = vector.shape_cast %90 : vector<2x8x8xf32> to vector<16x8xf32>
    %c0_31 = arith.constant 0 : index
    %c8 = arith.constant 8 : index
    %92 = vector.load %arg22[%c0_31, %c8] : memref<16x32xf32, #tpu.memory_space<vmem>>, vector<16x8xf32>
    tpu.vector_store %arg22[%c0_31, %c8], %91 {strides = array<i32>} : memref<16x32xf32, #tpu.memory_space<vmem>>, vector<16x8xf32>,
    %93 = vector.extract_strided_slice %44 {offsets = [0, 16], sizes = [16, 8], strides = [1, 1]} : vector<16x96xbf16> to vector<16x8xbf16>
    %94 = vector.shape_cast %93 : vector<16x8xbf16> to vector<2x8x8xbf16>
    %95 = vector.extract_strided_slice %44 {offsets = [0, 48], sizes = [16, 8], strides = [1, 1]} : vector<16x96xbf16> to vector<16x8xbf16>
    %96 = vector.shape_cast %95 : vector<16x8xbf16> to vector<2x8x8xbf16>
    %97 = vector.extract_strided_slice %44 {offsets = [0, 80], sizes = [16, 8], strides = [1, 1]} : vector<16x96xbf16> to vector<16x8xbf16>
    %98 = vector.shape_cast %97 : vector<16x8xbf16> to vector<2x8x8xbf16>
    "tpu.trace_start"() <{level = 10 : i32, message = "bqd,bkd->bqk"}> : () -> ()
    %cst_32 = arith.constant dense<0.000000e+00> : vector<2x8x8xf32>
    %99 = tpu.matmul %94, %96, %cst_32 {dimension_numbers = #tpu.dot_dimension_numbers<[2], [2], [1], [1], [0, 0, 0, 1, 1, 1], [0], [0]>} : vector<2x8x8xbf16>, vector<2x8x8xbf16>, vector<2x8x8xf32> -> vector<2x8x8xf32>
    "tpu.trace_stop"() : () -> ()
    %100 = vector.shape_cast %9 : vector<8x8xf32> to vector<1x8x8xf32>
    %101 = vector.broadcast %100 : vector<1x8x8xf32> to vector<2x8x8xf32>
    %102 = arith.addf %99, %101 : vector<2x8x8xf32>
    %cst_33 = arith.constant dense<0xFF800000> : vector<2x8xf32>
    %103 = vector.multi_reduction <maximumf>, %102, %cst_33 [2] : vector<2x8x8xf32> to vector<2x8xf32>
    %104 = vector.shape_cast %103 : vector<2x8xf32> to vector<2x8x1xf32>
    %105 = vector.broadcast %104 : vector<2x8x1xf32> to vector<2x8x8xf32>
    %106 = arith.subf %102, %105 : vector<2x8x8xf32>
    %107 = math.exp %106 : vector<2x8x8xf32>
    %cst_34 = arith.constant dense<0.000000e+00> : vector<2x8xf32>
    %108 = vector.multi_reduction <add>, %107, %cst_34 [2] : vector<2x8x8xf32> to vector<2x8xf32>
    %109 = vector.shape_cast %108 : vector<2x8xf32> to vector<2x8x1xf32>
    %110 = tpu.reciprocal %109 {approx = true} : vector<2x8x1xf32> -> vector<2x8x1xf32>
    %111 = vector.broadcast %110 : vector<2x8x1xf32> to vector<2x8x8xf32>
    %112 = arith.mulf %107, %111 : vector<2x8x8xf32>
    %113 = arith.truncf %112 : vector<2x8x8xf32> to vector<2x8x8xbf16>
    "tpu.trace_start"() <{level = 10 : i32, message = "bqk,bkd->bqd"}> : () -> ()
    %cst_35 = arith.constant dense<0.000000e+00> : vector<2x8x8xf32>
    %114 = tpu.matmul %113, %98, %cst_35 {dimension_numbers = #tpu.dot_dimension_numbers<[2], [1], [1], [2], [0, 0, 0, 1, 1, 2], [0], [0]>} : vector<2x8x8xbf16>, vector<2x8x8xbf16>, vector<2x8x8xf32> -> vector<2x8x8xf32>
    "tpu.trace_stop"() : () -> ()
    %115 = vector.shape_cast %114 : vector<2x8x8xf32> to vector<16x8xf32>
    %c0_36 = arith.constant 0 : index
    %c16 = arith.constant 16 : index
    %116 = vector.load %arg22[%c0_36, %c16] : memref<16x32xf32, #tpu.memory_space<vmem>>, vector<16x8xf32>
    tpu.vector_store %arg22[%c0_36, %c16], %115 {strides = array<i32>} : memref<16x32xf32, #tpu.memory_space<vmem>>, vector<16x8xf32>,
    %117 = vector.extract_strided_slice %44 {offsets = [0, 24], sizes = [16, 8], strides = [1, 1]} : vector<16x96xbf16> to vector<16x8xbf16>
    %118 = vector.shape_cast %117 : vector<16x8xbf16> to vector<2x8x8xbf16>
    %119 = vector.extract_strided_slice %44 {offsets = [0, 56], sizes = [16, 8], strides = [1, 1]} : vector<16x96xbf16> to vector<16x8xbf16>
    %120 = vector.shape_cast %119 : vector<16x8xbf16> to vector<2x8x8xbf16>
    %121 = vector.extract_strided_slice %44 {offsets = [0, 88], sizes = [16, 8], strides = [1, 1]} : vector<16x96xbf16> to vector<16x8xbf16>
    %122 = vector.shape_cast %121 : vector<16x8xbf16> to vector<2x8x8xbf16>
    "tpu.trace_start"() <{level = 10 : i32, message = "bqd,bkd->bqk"}> : () -> ()
    %cst_37 = arith.constant dense<0.000000e+00> : vector<2x8x8xf32>
    %123 = tpu.matmul %118, %120, %cst_37 {dimension_numbers = #tpu.dot_dimension_numbers<[2], [2], [1], [1], [0, 0, 0, 1, 1, 1], [0], [0]>} : vector<2x8x8xbf16>, vector<2x8x8xbf16>, vector<2x8x8xf32> -> vector<2x8x8xf32>
    "tpu.trace_stop"() : () -> ()
    %124 = vector.shape_cast %9 : vector<8x8xf32> to vector<1x8x8xf32>
    %125 = vector.broadcast %124 : vector<1x8x8xf32> to vector<2x8x8xf32>
    %126 = arith.addf %123, %125 : vector<2x8x8xf32>
    %cst_38 = arith.constant dense<0xFF800000> : vector<2x8xf32>
    %127 = vector.multi_reduction <maximumf>, %126, %cst_38 [2] : vector<2x8x8xf32> to vector<2x8xf32>
    %128 = vector.shape_cast %127 : vector<2x8xf32> to vector<2x8x1xf32>
    %129 = vector.broadcast %128 : vector<2x8x1xf32> to vector<2x8x8xf32>
    %130 = arith.subf %126, %129 : vector<2x8x8xf32>
    %131 = math.exp %130 : vector<2x8x8xf32>
    %cst_39 = arith.constant dense<0.000000e+00> : vector<2x8xf32>
    %132 = vector.multi_reduction <add>, %131, %cst_39 [2] : vector<2x8x8xf32> to vector<2x8xf32>
    %133 = vector.shape_cast %132 : vector<2x8xf32> to vector<2x8x1xf32>
    %134 = tpu.reciprocal %133 {approx = true} : vector<2x8x1xf32> -> vector<2x8x1xf32>
    %135 = vector.broadcast %134 : vector<2x8x1xf32> to vector<2x8x8xf32>
    %136 = arith.mulf %131, %135 : vector<2x8x8xf32>
    %137 = arith.truncf %136 : vector<2x8x8xf32> to vector<2x8x8xbf16>
    "tpu.trace_start"() <{level = 10 : i32, message = "bqk,bkd->bqd"}> : () -> ()
    %cst_40 = arith.constant dense<0.000000e+00> : vector<2x8x8xf32>
    %138 = tpu.matmul %137, %122, %cst_40 {dimension_numbers = #tpu.dot_dimension_numbers<[2], [1], [1], [2], [0, 0, 0, 1, 1, 2], [0], [0]>} : vector<2x8x8xbf16>, vector<2x8x8xbf16>, vector<2x8x8xf32> -> vector<2x8x8xf32>
    "tpu.trace_stop"() : () -> ()
    %139 = vector.shape_cast %138 : vector<2x8x8xf32> to vector<16x8xf32>
    %c0_41 = arith.constant 0 : index
    %c24 = arith.constant 24 : index
    %140 = vector.load %arg22[%c0_41, %c24] : memref<16x32xf32, #tpu.memory_space<vmem>>, vector<16x8xf32>
    tpu.vector_store %arg22[%c0_41, %c24], %139 {strides = array<i32>} : memref<16x32xf32, #tpu.memory_space<vmem>>, vector<16x8xf32>,
    %c0_42 = arith.constant 0 : index
    %c0_43 = arith.constant 0 : index
    %141 = vector.load %arg22[%c0_42, %c0_43] : memref<16x32xf32, #tpu.memory_space<vmem>>, vector<16x32xf32>
    %142 = arith.truncf %141 : vector<16x32xf32> to vector<16x32xbf16>
    %c0_44 = arith.constant 0 : index
    %c0_45 = arith.constant 0 : index
    %c0_46 = arith.constant 0 : index
    %143 = vector.load %arg8[%c0_44, %c0_45, %c0_46] : memref<1x32x32xbf16, #tpu.memory_space<vmem>>, vector<1x32x32xbf16>
    %144 = vector.shape_cast %143 : vector<1x32x32xbf16> to vector<32x32xbf16>
    %cst_47 = arith.constant dense<0.000000e+00> : vector<16x32xf32>
    %145 = tpu.matmul %142, %144, %cst_47 {dimension_numbers = #tpu.dot_dimension_numbers<[1], [0], [0], [1], [0, 0, 1, 1], [], []>} : vector<16x32xbf16>, vector<32x32xbf16>, vector<16x32xf32> -> vector<16x32xf32>
    %c0_48 = arith.constant 0 : index
    %c0_49 = arith.constant 0 : index
    %c0_50 = arith.constant 0 : index
    %146 = vector.load %arg9[%c0_48, %c0_49, %c0_50] : memref<1x1x32xf32, #tpu.memory_space<vmem>>, vector<1x1x32xf32>
    %147 = vector.shape_cast %146 : vector<1x1x32xf32> to vector<1x32xf32>
    %148 = vector.broadcast %147 : vector<1x32xf32> to vector<16x32xf32>
    %149 = arith.addf %145, %148 : vector<16x32xf32>
    %150 = arith.addf %3, %149 : vector<16x32xf32>
    %c0_51 = arith.constant 0 : index
    %c0_52 = arith.constant 0 : index
    %c0_53 = arith.constant 0 : index
    %151 = vector.load %arg10[%c0_51, %c0_52, %c0_53] : memref<1x1x32xf32, #tpu.memory_space<vmem>>, vector<1x1x32xf32>
    %152 = vector.shape_cast %151 : vector<1x1x32xf32> to vector<1x32xf32>
    %c0_54 = arith.constant 0 : index
    %c0_55 = arith.constant 0 : index
    %c0_56 = arith.constant 0 : index
    %153 = vector.load %arg11[%c0_54, %c0_55, %c0_56] : memref<1x1x32xf32, #tpu.memory_space<vmem>>, vector<1x1x32xf32>
    %154 = vector.shape_cast %153 : vector<1x1x32xf32> to vector<1x32xf32>
    %cst_57 = arith.constant dense<0.000000e+00> : vector<16xf32>
    %155 = vector.multi_reduction <add>, %150, %cst_57 [1] : vector<16x32xf32> to vector<16xf32>
    %156 = vector.shape_cast %155 : vector<16xf32> to vector<16x1xf32>
    %cst_58 = arith.constant 3.200000e+01 : f32
    %157 = vector.broadcast %cst_58 : f32 to vector<16x1xf32>
    %158 = arith.divf %156, %157 : vector<16x1xf32>
    %159 = arith.mulf %150, %150 : vector<16x32xf32>
    %cst_59 = arith.constant dense<0.000000e+00> : vector<16xf32>
    %160 = vector.multi_reduction <add>, %159, %cst_59 [1] : vector<16x32xf32> to vector<16xf32>
    %161 = vector.shape_cast %160 : vector<16xf32> to vector<16x1xf32>
    %cst_60 = arith.constant 3.200000e+01 : f32
    %162 = vector.broadcast %cst_60 : f32 to vector<16x1xf32>
    %163 = arith.divf %161, %162 : vector<16x1xf32>
    %164 = arith.mulf %158, %158 : vector<16x1xf32>
    %165 = arith.subf %163, %164 : vector<16x1xf32>
    %166 = vector.broadcast %158 : vector<16x1xf32> to vector<16x32xf32>
    %167 = arith.subf %150, %166 : vector<16x32xf32>
    %cst_61 = arith.constant 9.99999974E-6 : f32
    %168 = vector.broadcast %cst_61 : f32 to vector<16x1xf32>
    %169 = arith.addf %165, %168 : vector<16x1xf32>
    %170 = math.rsqrt %169 : vector<16x1xf32>
    %171 = vector.broadcast %170 : vector<16x1xf32> to vector<16x32xf32>
    %172 = arith.mulf %167, %171 : vector<16x32xf32>
    %173 = vector.broadcast %152 : vector<1x32xf32> to vector<16x32xf32>
    %174 = arith.mulf %172, %173 : vector<16x32xf32>
    %175 = vector.broadcast %154 : vector<1x32xf32> to vector<16x32xf32>
    %176 = arith.addf %174, %175 : vector<16x32xf32>
    %177 = arith.truncf %176 : vector<16x32xf32> to vector<16x32xbf16>
    %c0_62 = arith.constant 0 : index
    %c0_63 = arith.constant 0 : index
    %c0_64 = arith.constant 0 : index
    %178 = vector.load %arg12[%c0_62, %c0_63, %c0_64] : memref<1x32x128xbf16, #tpu.memory_space<vmem>>, vector<1x32x128xbf16>
    %179 = vector.shape_cast %178 : vector<1x32x128xbf16> to vector<32x128xbf16>
    %cst_65 = arith.constant dense<0.000000e+00> : vector<16x128xf32>
    %180 = tpu.matmul %177, %179, %cst_65 {dimension_numbers = #tpu.dot_dimension_numbers<[1], [0], [0], [1], [0, 0, 1, 1], [], []>} : vector<16x32xbf16>, vector<32x128xbf16>, vector<16x128xf32> -> vector<16x128xf32>
    %c0_66 = arith.constant 0 : index
    %c0_67 = arith.constant 0 : index
    %c0_68 = arith.constant 0 : index
    %181 = vector.load %arg13[%c0_66, %c0_67, %c0_68] : memref<1x1x128xf32, #tpu.memory_space<vmem>>, vector<1x1x128xf32>
    %182 = vector.shape_cast %181 : vector<1x1x128xf32> to vector<1x128xf32>
    %183 = vector.broadcast %182 : vector<1x128xf32> to vector<16x128xf32>
    %184 = arith.addf %180, %183 : vector<16x128xf32>
    %185 = arith.truncf %184 : vector<16x128xf32> to vector<16x128xbf16>
    %cst_69 = arith.constant 1.703130e+00 : bf16
    %186 = vector.broadcast %cst_69 : bf16 to vector<16x128xbf16>
    %187 = arith.mulf %186, %185 : vector<16x128xbf16>
    %188 = arith.negf %187 : vector<16x128xbf16>
    %189 = math.exp %188 : vector<16x128xbf16>
    %cst_70 = arith.constant 1.000000e+00 : bf16
    %190 = vector.broadcast %cst_70 : bf16 to vector<16x128xbf16>
    %191 = arith.addf %190, %189 : vector<16x128xbf16>
    %192 = arith.divf %190, %191 : vector<16x128xbf16>
    %193 = arith.mulf %185, %192 : vector<16x128xbf16>
    %c0_71 = arith.constant 0 : index
    %c0_72 = arith.constant 0 : index
    %c0_73 = arith.constant 0 : index
    %194 = vector.load %arg14[%c0_71, %c0_72, %c0_73] : memref<1x128x32xbf16, #tpu.memory_space<vmem>>, vector<1x128x32xbf16>
    %195 = vector.shape_cast %194 : vector<1x128x32xbf16> to vector<128x32xbf16>
    %cst_74 = arith.constant dense<0.000000e+00> : vector<16x32xf32>
    %196 = tpu.matmul %193, %195, %cst_74 {dimension_numbers = #tpu.dot_dimension_numbers<[1], [0], [0], [1], [0, 0, 1, 1], [], []>} : vector<16x128xbf16>, vector<128x32xbf16>, vector<16x32xf32> -> vector<16x32xf32>
    %c0_75 = arith.constant 0 : index
    %c0_76 = arith.constant 0 : index
    %c0_77 = arith.constant 0 : index
    %197 = vector.load %arg15[%c0_75, %c0_76, %c0_77] : memref<1x1x32xf32, #tpu.memory_space<vmem>>, vector<1x1x32xf32>
    %198 = vector.shape_cast %197 : vector<1x1x32xf32> to vector<1x32xf32>
    %199 = vector.broadcast %198 : vector<1x32xf32> to vector<16x32xf32>
    %200 = arith.addf %196, %199 : vector<16x32xf32>
    %201 = arith.addf %150, %200 : vector<16x32xf32>
    %c0_78 = arith.constant 0 : index
    %c0_79 = arith.constant 0 : index
    %202 = vector.load %arg21[%c0_78, %c0_79] : memref<16x32xf32, #tpu.memory_space<vmem>>, vector<16x32xf32>
    tpu.vector_store %arg21[%c0_78, %c0_79], %201 {strides = array<i32>} : memref<16x32xf32, #tpu.memory_space<vmem>>, vector<16x32xf32>,
    %c1_i32 = arith.constant 1 : i32
    %203 = arith.cmpi eq, %arg1, %c1_i32 : i32
    %204 = arith.extui %203 : i1 to i32
    %c0_i32_80 = arith.constant 0 : i32
    %205 = arith.cmpi ne, %204, %c0_i32_80 : i32
    scf.if %205 {
      %c2_i32 = arith.constant 2 : i32
      %206 = arith.muli %arg0, %c2_i32 : i32
      %c0_i32_81 = arith.constant 0 : i32
      %207 = arith.addi %206, %c0_i32_81 : i32
      %208 = arith.index_cast %207 : i32 to index
      %209 = memref.load %arg2[%208] : memref<2xi32, #tpu.memory_space<smem>>
      %c0_i32_82 = arith.constant 0 : i32
      %210 = arith.addi %c0_i32_82, %209 : i32
      %211 = arith.index_cast %210 : i32 to index
      %c0_83 = arith.constant 0 : index
      %212 = vector.load %arg21[%211, %c0_83] : memref<16x32xf32, #tpu.memory_space<vmem>>, vector<1x32xf32>
      %c2_i32_84 = arith.constant 2 : i32
      %213 = arith.muli %arg0, %c2_i32_84 : i32
      %c1_i32_85 = arith.constant 1 : i32
      %214 = arith.addi %213, %c1_i32_85 : i32
      %215 = arith.index_cast %214 : i32 to index
      %216 = memref.load %arg2[%215] : memref<2xi32, #tpu.memory_space<smem>>
      %c8_i32 = arith.constant 8 : i32
      %217 = arith.addi %c8_i32, %216 : i32
      %218 = arith.index_cast %217 : i32 to index
      %c0_86 = arith.constant 0 : index
      %219 = vector.load %arg21[%218, %c0_86] : memref<16x32xf32, #tpu.memory_space<vmem>>, vector<1x32xf32>
      %220 = tpu.concatenate %212, %219 in 0 : vector<1x32xf32>, vector<1x32xf32> -> vector<2x32xf32>
      %c0_87 = arith.constant 0 : index
      %c0_88 = arith.constant 0 : index
      %221 = vector.load %arg16[%c0_87, %c0_88] : memref<1x32xf32, #tpu.memory_space<vmem>>, vector<1x32xf32>
      %c0_89 = arith.constant 0 : index
      %c0_90 = arith.constant 0 : index
      %222 = vector.load %arg17[%c0_89, %c0_90] : memref<1x32xf32, #tpu.memory_space<vmem>>, vector<1x32xf32>
      %cst_91 = arith.constant dense<0.000000e+00> : vector<2xf32>
      %223 = vector.multi_reduction <add>, %220, %cst_91 [1] : vector<2x32xf32> to vector<2xf32>
      %224 = vector.shape_cast %223 : vector<2xf32> to vector<2x1xf32>
      %cst_92 = arith.constant 3.200000e+01 : f32
      %225 = vector.broadcast %cst_92 : f32 to vector<2x1xf32>
      %226 = arith.divf %224, %225 : vector<2x1xf32>
      %227 = arith.mulf %220, %220 : vector<2x32xf32>
      %cst_93 = arith.constant dense<0.000000e+00> : vector<2xf32>
      %228 = vector.multi_reduction <add>, %227, %cst_93 [1] : vector<2x32xf32> to vector<2xf32>
      %229 = vector.shape_cast %228 : vector<2xf32> to vector<2x1xf32>
      %cst_94 = arith.constant 3.200000e+01 : f32
      %230 = vector.broadcast %cst_94 : f32 to vector<2x1xf32>
      %231 = arith.divf %229, %230 : vector<2x1xf32>
      %232 = arith.mulf %226, %226 : vector<2x1xf32>
      %233 = arith.subf %231, %232 : vector<2x1xf32>
      %234 = vector.broadcast %226 : vector<2x1xf32> to vector<2x32xf32>
      %235 = arith.subf %220, %234 : vector<2x32xf32>
      %cst_95 = arith.constant 9.99999974E-6 : f32
      %236 = vector.broadcast %cst_95 : f32 to vector<2x1xf32>
      %237 = arith.addf %233, %236 : vector<2x1xf32>
      %238 = math.rsqrt %237 : vector<2x1xf32>
      %239 = vector.broadcast %238 : vector<2x1xf32> to vector<2x32xf32>
      %240 = arith.mulf %235, %239 : vector<2x32xf32>
      %241 = vector.broadcast %221 : vector<1x32xf32> to vector<2x32xf32>
      %242 = arith.mulf %240, %241 : vector<2x32xf32>
      %243 = vector.broadcast %222 : vector<1x32xf32> to vector<2x32xf32>
      %244 = arith.addf %242, %243 : vector<2x32xf32>
      %245 = arith.truncf %244 : vector<2x32xf32> to vector<2x32xbf16>
      %c0_96 = arith.constant 0 : index
      %c0_97 = arith.constant 0 : index
      %246 = vector.load %arg18[%c0_96, %c0_97] : memref<32x16xbf16, #tpu.memory_space<vmem>>, vector<32x16xbf16>
      %cst_98 = arith.constant dense<0.000000e+00> : vector<2x16xf32>
      %247 = tpu.matmul %245, %246, %cst_98 {dimension_numbers = #tpu.dot_dimension_numbers<[1], [0], [0], [1], [0, 0, 1, 1], [], []>} : vector<2x32xbf16>, vector<32x16xbf16>, vector<2x16xf32> -> vector<2x16xf32>
      %c0_99 = arith.constant 0 : index
      %c0_100 = arith.constant 0 : index
      %248 = vector.load %arg20[%c0_99, %c0_100] : memref<2x16xf32, #tpu.memory_space<vmem>>, vector<2x16xf32>
      tpu.vector_store %arg20[%c0_99, %c0_100], %247 {strides = array<i32>} : memref<2x16xf32, #tpu.memory_space<vmem>>, vector<2x16xf32>,
    } else {
    }
    return
  }
  func.func @transform_0(%arg0: i32, %arg1: i32, %arg2: memref<2xi32, #tpu.memory_space<smem>>) -> (i32, i32, i32) {
    %c0_i32 = arith.constant 0 : i32
    %c0_i32_0 = arith.constant 0 : i32
    %c0_i32_1 = arith.constant 0 : i32
    return %arg0, %c0_i32, %c0_i32_0 : i32, i32, i32
  }
  func.func @transform_1(%arg0: i32, %arg1: i32, %arg2: memref<2xi32, #tpu.memory_space<smem>>) -> (i32, i32, i32) {
    %c0_i32 = arith.constant 0 : i32
    %c0_i32_0 = arith.constant 0 : i32
    %c0_i32_1 = arith.constant 0 : i32
    return %arg1, %c0_i32, %c0_i32_0 : i32, i32, i32
  }
  func.func @transform_2(%arg0: i32, %arg1: i32, %arg2: memref<2xi32, #tpu.memory_space<smem>>) -> (i32, i32, i32) {
    %c0_i32 = arith.constant 0 : i32
    %c0_i32_0 = arith.constant 0 : i32
    %c0_i32_1 = arith.constant 0 : i32
    return %arg1, %c0_i32, %c0_i32_0 : i32, i32, i32
  }
  func.func @transform_3(%arg0: i32, %arg1: i32, %arg2: memref<2xi32, #tpu.memory_space<smem>>) -> (i32, i32, i32) {
    %c0_i32 = arith.constant 0 : i32
    %c0_i32_0 = arith.constant 0 : i32
    %c0_i32_1 = arith.constant 0 : i32
    return %arg1, %c0_i32, %c0_i32_0 : i32, i32, i32
  }
  func.func @transform_4(%arg0: i32, %arg1: i32, %arg2: memref<2xi32, #tpu.memory_space<smem>>) -> (i32, i32, i32) {
    %c0_i32 = arith.constant 0 : i32
    %c0_i32_0 = arith.constant 0 : i32
    %c0_i32_1 = arith.constant 0 : i32
    return %arg1, %c0_i32, %c0_i32_0 : i32, i32, i32
  }
  func.func @transform_5(%arg0: i32, %arg1: i32, %arg2: memref<2xi32, #tpu.memory_space<smem>>) -> (i32, i32, i32) {
    %c0_i32 = arith.constant 0 : i32
    %c0_i32_0 = arith.constant 0 : i32
    %c0_i32_1 = arith.constant 0 : i32
    return %arg1, %c0_i32, %c0_i32_0 : i32, i32, i32
  }
  func.func @transform_6(%arg0: i32, %arg1: i32, %arg2: memref<2xi32, #tpu.memory_space<smem>>) -> (i32, i32, i32) {
    %c0_i32 = arith.constant 0 : i32
    %c0_i32_0 = arith.constant 0 : i32
    %c0_i32_1 = arith.constant 0 : i32
    return %arg1, %c0_i32, %c0_i32_0 : i32, i32, i32
  }
  func.func @transform_7(%arg0: i32, %arg1: i32, %arg2: memref<2xi32, #tpu.memory_space<smem>>) -> (i32, i32, i32) {
    %c0_i32 = arith.constant 0 : i32
    %c0_i32_0 = arith.constant 0 : i32
    %c0_i32_1 = arith.constant 0 : i32
    return %arg1, %c0_i32, %c0_i32_0 : i32, i32, i32
  }
  func.func @transform_8(%arg0: i32, %arg1: i32, %arg2: memref<2xi32, #tpu.memory_space<smem>>) -> (i32, i32, i32) {
    %c0_i32 = arith.constant 0 : i32
    %c0_i32_0 = arith.constant 0 : i32
    %c0_i32_1 = arith.constant 0 : i32
    return %arg1, %c0_i32, %c0_i32_0 : i32, i32, i32
  }
  func.func @transform_9(%arg0: i32, %arg1: i32, %arg2: memref<2xi32, #tpu.memory_space<smem>>) -> (i32, i32, i32) {
    %c0_i32 = arith.constant 0 : i32
    %c0_i32_0 = arith.constant 0 : i32
    %c0_i32_1 = arith.constant 0 : i32
    return %arg1, %c0_i32, %c0_i32_0 : i32, i32, i32
  }
  func.func @transform_10(%arg0: i32, %arg1: i32, %arg2: memref<2xi32, #tpu.memory_space<smem>>) -> (i32, i32, i32) {
    %c0_i32 = arith.constant 0 : i32
    %c0_i32_0 = arith.constant 0 : i32
    %c0_i32_1 = arith.constant 0 : i32
    return %arg1, %c0_i32, %c0_i32_0 : i32, i32, i32
  }
  func.func @transform_11(%arg0: i32, %arg1: i32, %arg2: memref<2xi32, #tpu.memory_space<smem>>) -> (i32, i32, i32) {
    %c0_i32 = arith.constant 0 : i32
    %c0_i32_0 = arith.constant 0 : i32
    %c0_i32_1 = arith.constant 0 : i32
    return %arg1, %c0_i32, %c0_i32_0 : i32, i32, i32
  }
  func.func @transform_12(%arg0: i32, %arg1: i32, %arg2: memref<2xi32, #tpu.memory_space<smem>>) -> (i32, i32, i32) {
    %c0_i32 = arith.constant 0 : i32
    %c0_i32_0 = arith.constant 0 : i32
    %c0_i32_1 = arith.constant 0 : i32
    return %arg1, %c0_i32, %c0_i32_0 : i32, i32, i32
  }
  func.func @transform_13(%arg0: i32, %arg1: i32, %arg2: memref<2xi32, #tpu.memory_space<smem>>) -> (i32, i32) {
    %c0_i32 = arith.constant 0 : i32
    %c0_i32_0 = arith.constant 0 : i32
    %c0_i32_1 = arith.constant 0 : i32
    return %c0_i32, %c0_i32_0 : i32, i32
  }
  func.func @transform_14(%arg0: i32, %arg1: i32, %arg2: memref<2xi32, #tpu.memory_space<smem>>) -> (i32, i32) {
    %c0_i32 = arith.constant 0 : i32
    %c0_i32_0 = arith.constant 0 : i32
    %c0_i32_1 = arith.constant 0 : i32
    return %c0_i32, %c0_i32_0 : i32, i32
  }
  func.func @transform_15(%arg0: i32, %arg1: i32, %arg2: memref<2xi32, #tpu.memory_space<smem>>) -> (i32, i32) {
    %c0_i32 = arith.constant 0 : i32
    %c0_i32_0 = arith.constant 0 : i32
    %c0_i32_1 = arith.constant 0 : i32
    return %c0_i32, %c0_i32_0 : i32, i32
  }
  func.func @transform_16(%arg0: i32, %arg1: i32, %arg2: memref<2xi32, #tpu.memory_space<smem>>) -> (i32, i32) {
    %c0_i32 = arith.constant 0 : i32
    %c0_i32_0 = arith.constant 0 : i32
    %c0_i32_1 = arith.constant 0 : i32
    return %c0_i32, %c0_i32_0 : i32, i32
  }
  func.func @transform_17(%arg0: i32, %arg1: i32, %arg2: memref<2xi32, #tpu.memory_space<smem>>) -> (i32, i32) {
    %c0_i32 = arith.constant 0 : i32
    %c0_i32_0 = arith.constant 0 : i32
    return %arg0, %c0_i32 : i32, i32
  }
}

</mosaic_0001>

<bundles_post_ra>
// kernel: tpu_custom_call.1
= control target key start
LH: loop header
LB: loop body
LE: loop exit
PB: predicated region body
PF: predicated region fallthrough
CT: control target
= control target key end

     0   :  { %s3407_s0 = inlined_call_operand.vmem [shape: s32[2], index: 0, kind: input, shape index: {}]   ;;  %s3408_s1 = inlined_call_operand.vmem [shape: bf16[2,8,32], index: 1, kind: input, shape index: {}]   ;;  %s3409_s2 = inlined_call_operand.vmem [shape: f32[2,1,32], index: 2, kind: input, shape index: {}]   ;;  %s3410_s3 = inlined_call_operand.vmem [shape: f32[2,1,32], index: 3, kind: input, shape index: {}]   ;;  %s3411_s4 = inlined_call_operand.vmem [shape: bf16[2,32,96], index: 4, kind: input, shape index: {}]   ;;  %s3412_s5 = inlined_call_operand.vmem [shape: f32[2,1,96], index: 5, kind: input, shape index: {}]   ;;  %s3413_s6 = inlined_call_operand.vmem [shape: bf16[2,32,32], index: 6, kind: input, shape index: {}]   ;;  %s3414_s7 = inlined_call_operand.vmem [shape: f32[2,1,32], index: 7, kind: input, shape index: {}]   ;;  %s3415_s8 = inlined_call_operand.vmem [shape: f32[2,1,32], index: 8, kind: input, shape index: {}]   ;;  %s3416_s9 = inlined_call_operand.vmem [shape: f32[2,1,32], index: 9, kind: input, shape index: {}]   ;;  %s3417_s10 = inlined_call_operand.vmem [shape: bf16[2,32,128], index: 10, kind: input, shape index: {}]   ;;  %s3418_s11 = inlined_call_operand.vmem [shape: f32[2,1,128], index: 11, kind: input, shape index: {}]   ;;  %s3419_s12 = inlined_call_operand.vmem [shape: bf16[2,128,32], index: 12, kind: input, shape index: {}]   ;;  %s3420_s13 = inlined_call_operand.vmem [shape: f32[2,1,32], index: 13, kind: input, shape index: {}]   ;;  %s3421_s14 = inlined_call_operand.vmem [shape: f32[1,32], index: 14, kind: input, shape index: {}]   ;;  %s3422_s15 = inlined_call_operand.vmem [shape: f32[1,32], index: 15, kind: input, shape index: {}]   ;;  %s3423_s16 = inlined_call_operand.vmem [shape: bf16[32,16], index: 16, kind: input, shape index: {}]   ;;  %s3424_s17 = inlined_call_operand.vmem [shape: f32[8,32], index: 17, kind: input, shape index: {}]   ;;  %s3425_s18 = inlined_call_operand.hbm [shape: f32[2,16], index: 18, kind: output, shape index: {}]  }
   0x1   :  { %3430 = sst [smem:[#allocation13_spill]] %s3407_s0 }
   0x2   :  { %3431 = sst [smem:[#allocation14_spill]] %s3408_s1  ;;  %s3440_s29 = sld [smem:[#allocation13_spill]] }
   0x3   :  { %3432 = sst [smem:[#allocation15_spill]] %s3409_s2 }
   0x4   :  { %3433 = sst [smem:[#allocation16_spill]] %s3411_s4 }
   0x5   :  { %3434 = sst [smem:[#allocation17_spill]] %s3413_s6 }
   0x6   :  { %3435 = sst [smem:[#allocation18_spill]] %s3419_s12 }
   0x7   :  { %3436 = sst [smem:[#allocation19_spill]] %s3421_s14 }
   0x8   :  { %3437 = sst [smem:[#allocation20_spill]] %s3422_s15  ;;  %s23_s12 = sshll.u32 %s3440_s29, 4  ;;  %s24_s12 = int_to_ptr.vmem [resolvable:$true] %s23_s12 }
   0x9   :  { %3438 = sst [smem:[#allocation21_spill]] %s3423_s16  ;;  %s2820_s30 = scalar_lea.vmem %s24_s12, 16 }
   0xa   :  { %3439 = sst [smem:[#allocation22_spill]] %s3425_s18  ;;  %p2821_p0 = scmp.ne.s32.totalorder %s24_s12, %s2820_s30 }
   0xb   :  { %p2825_p1 = scmp.lt.s32.totalorder %s24_s12, %s24_s12  ;;  %p2826_p2 = scmp.lt.s32.totalorder %s2820_s30, %s2820_s30 }
   0xd   :  { %p2827_p3 = por %p2826_p2, %p2825_p1 }
   0xf   :  { %p2828_p4 = pnand %p2827_p3, %p2821_p0 }
  0x11   :  { %2831 = shalt.err (!%p2828_p4)  }
  0x12   :  { %s2888_s0 = smov [#allocation5]  }
  0x13   :  { %26 = dma.vmem_to_smem %s24_s12, 16, %s2888_s0, [#allocation4] }
  0x14   :  { %2870 = dma.done.wait [#allocation4], 16 }
  0x15   :  { %2871 = vsyncadd [#allocation4], 4294967280 }
  0x16   :  { %28 = sfence }
  0x17   :  { %29 = vsyncpa [#allocation7], 0  ;;  %s3007_s19 = smov 0   ;;  %s3009_s1 = smov 0  }
  0x18   :  { %s3011_s20 = smov 0  }
  0x19 LB: > { %3441 = sst [smem:[#allocation10_spill]] %s2882_s1  ;;  %s44_s21 = sadd.s32 1, %s2882_s1  ;;  %s2886_s20 = sphi %s3011_s20, %s35_s20   ;;  %s2882_s1 = sphi %s3009_s1, %s3463_s1   ;;  %s2878_s19 = sphi %s3007_s19, %s3462_s19  }
  0x1a   : > { %3442 = sst [smem:[#allocation11_spill]] %s2886_s20  ;;  %p45_p5 = scmp.ge.s32.totalorder %s44_s21, 2 }
  0x1b   : > { %p2430_p6 = scmp.ge.s32.totalorder %s2886_s20, 1  ;;  %p612_p7 = scmp.lt.s32.totalorder %s2886_s20, 3 }
  0x1c   : > { %s3465_s21 = smov (%p45_p5, %s44_s21), 0 }
  0x1d   : > { %3443 = sst [smem:[#allocation12_spill]] %s3465_s21  ;;  %p613_p8 = pnand %p2430_p6, %p612_p7 }
  0x1e   : > { %p709_p9 = scmp.lt.s32.totalorder (!%p613_p8), %s2878_s19, 1  ;;  %s3445_s4 = sld [smem:[#allocation16_spill]] (!%p613_p8) }
  0x1f   : > { %616 = sbr.rel (%p613_p8) target bundleno = 4359 (0x1107), region = 88  ;;  %s3446_s6 = sld [smem:[#allocation17_spill]] (!%p613_p8) }
  0x20   : > { %s3447_s26 = sld [smem:[#allocation18_spill]] (!%p613_p8)  ;;  %p2439_p10 = scmp.ne.s32.totalorder (!%p613_p8), %s2878_s19, 0 }
  0x26   : > { %s3030_s22 = scalar_select %p709_p9, %s2878_s19, 1 }
  0x27   : > { %759 = sbr.rel (%p2439_p10) target bundleno = 51 (0x33), region = 92  ;;  %s3448_s2 = sld [smem:[#allocation14_spill]] (!%p2439_p10)  ;;  %v764_v1 = vld [vmem:[%s3424_s17] sm:$0xff] (!%p2439_p10)  ;;  %vm767_vm0 = vcmask (!%p2439_p10), 261120  }
  0x28   : > { %s2496_s29 = sshll.u32 %s3030_s22, 4  ;;  %s733_s15 = scalar_lea.vmem %s3415_s8, %s3030_s22 }
  0x29   : > { %s3048_s21 = scalar_lea.vmem %s3445_s4, %s2496_s29  ;;  %s3053_s20 = scalar_lea.vmem %s3446_s6, %s2496_s29 }
  0x2a   : > { %s736_s12 = scalar_lea.vmem %s3416_s9, %s3030_s22  ;;  %s3070_s4 = scalar_lea.vmem %s3417_s10, %s2496_s29 }
  0x2b   : > { %s744_s6 = scalar_lea.vmem %s3418_s11, %s3030_s22  ;;  %s2499_s14 = sshll.u32 %s3030_s22, 6 }
  0x2c   : > { %s3080_s16 = scalar_lea.vmem %s3447_s26, %s2499_s14  ;;  %s752_s30 = scalar_lea.vmem %s3420_s13, %s3030_s22 }
  0x2d   : > { %v2503_v0 = vld [vmem:[%s3448_s2] sm:$0xff] (!%p2439_p10)  }
  0x2e   : > { %v2504_v2 = vunpack.c.l.bf16 %v2503_v0  ;;  %v2505_v3 = vunpack.c.h.bf16 %v2503_v0 }
  0x30   : > { %v765_v4 = vadd.f32 %v2504_v2, %v764_v1  ;;  %v766_v5 = vadd.f32 %v2505_v3, %v764_v1 }
  0x32   : > { %768 = vst.msk [vmem:[#allocation2] sm:$0xff] %vm767_vm0, %v765_v4  ;;  %769 = vst.msk [vmem:[#allocation2 + $0x8] sm:$0xff] %vm767_vm0, %v766_v5 }
  0x33 PF: > { %vm780_vm1 = vcmask 261120   ;;  %v2758_v14 = vld [vmem:[%s3048_s21] sm:$0xff]   ;;  %v2889_v15 = vmov 0.0   ;;  %vm2890_vm2 = vmmov 0   ;;  %v2759_v16 = vld [vmem:[%s3048_s21 + $0x8] sm:$0xff]   ;;  %s3449_s26 = sld [smem:[#allocation15_spill]]  ;;  %s3451_s28 = scalar_lea.vmem %s3410_s3, %s3030_s22  ;;  %v772_v57 = vlaneseq }
  0x34   : > { %2559 = vmatprep.subr.bf16.mxu0 %v2889_v15  ;;  %2563 = vmatprep.mubr.msk.bf16.mxu0 %vm2890_vm2, %v2889_v15  ;;  %v2441_v39 = vld [vmem:[%s3451_s28] ss:$0 sm:$0xff]  ;;  %s3452_s29 = scalar_lea.vmem %s3412_s5, %s3030_s22  ;;  %s2891_s2 = smov 96   ;;  %vm904_vm3 = vcmask 64512   ;;  %v2892_v60 = vmov -1e+30  }
  0x35   : > { %2560 = vmatpush3.bf16.msra.mxu0 %v2758_v14  ;;  %2579 = vmatprep.subr.bf16.mxu1 %v2889_v15  ;;  %v2442_v44 = vld [vmem:[%s3452_s29] ss:$0 sm:$0xff]  ;;  %v773_v58 = vshrl.u32 %v772_v57, 7  ;;  %v775_v59 = vand.u32 127, %v772_v57  ;;  %s2893_s23 = smov 64   ;;  %s2894_s18 = smov 88  }
  0x36   : > { %2561 = vmatprep.subr.bf16.mxu0 %v2889_v15  ;;  %2581 = vmatprep.mubr.msk.bf16.mxu1 %vm2890_vm2, %v2889_v15  ;;  %vm1028_vm5 = vcmask 1043456   ;;  %s2895_s14 = smov 120   ;;  %s2896_s21 = smov 56   ;;  %vm1350_vm6 = vcmask 130112   ;;  %vm1581_vm7 = vcmask 195712   ;;  %vm1812_vm8 = vcmask 261312  }
  0x37   : > { %vm776_vm4 = vcmp.le.s32.totalorder %v775_v59, %v773_v58  ;;  %s2899_s25 = smov 48   ;;  %s2900_s24 = smov 72  }
  0x38   : > { %v3155_v61 = vsel %vm776_vm4, 0.0, %v2892_v60  ;;  %s2901_s28 = smov 104   ;;  %s2902_s27 = smov 40  }
  0x39   : > { %v3093_v6 = vld [vmem:[#allocation2] sm:$0xff]  ;;  %v3095_v7 = vld [vmem:[#allocation2 + $0x8] sm:$0xff]  ;;  %2562 = vmatpush3.bf16.msra.mxu0 %v2759_v16  ;;  %s3450_s1 = scalar_lea.vmem %s3449_s26, %s3030_s22  ;;  %s2897_s26 = smov 80  }
  0x3a   : > { %v781_v8 = vsel %vm780_vm1, %v3093_v6, 0.0  ;;  %v790_v9 = vmul.f32 %v3093_v6, %v3093_v6  ;;  %v784_v10 = vsel %vm780_vm1, %v3095_v7, 0.0  ;;  %v791_v11 = vmul.f32 %v3095_v7, %v3095_v7  ;;  %2567 = vmatprep.subr.bf16.mxu0 %v2889_v15  ;;  %v2440_v34 = vld [vmem:[%s3450_s1] ss:$0 sm:$0xff]  ;;  %s2898_s1 = smov 112   ;;  %s2903_s0 = smov 8  }
  0x3b   : > { %782 = vadd.xlane.f32.xlu0 %v781_v8  ;;  %s2904_s29 = smov 16   ;;  %p2484_p11 = scmp.ne.s32.totalorder %s2878_s19, 1 }
  0x3c   : > { %v792_v12 = vsel %vm780_vm1, %v790_v9, 0.0  ;;  %v795_v13 = vsel %vm780_vm1, %v791_v11, 0.0  ;;  %vm2145_vm9 = vcmask (!%p2484_p11), 1040384   ;;  %vm2149_vm10 = vcmask (!%p2484_p11), 254976  }
  0x3d   : > { %793 = vadd.xlane.f32.xlu1 %v792_v12  ;;  %vm2907_vm11 = vmmov (!%p2484_p11), 0   ;;  %vm2239_vm12 = vcmask (!%p2484_p11), 123904  }
  0x3f   : > { %785 = vadd.xlane.f32.xlu0 %v784_v10 }
  0x41   : > { %796 = vadd.xlane.f32.xlu1 %v795_v13 }
  0xc8   : > { %v783_v17 = vpop.xlane.xlu0 %782 }
  0xc9   : > { %v788_v18 = vmul.f32 0.03125, %v783_v17 }
  0xca   : > { %v794_v19 = vpop.xlane.xlu1 %793 }
  0xcb   : > { %v800_v20 = vmul.f32 %v788_v18, %v788_v18  ;;  %v798_v21 = vmul.f32 0.03125, %v794_v19  ;;  %v804_v31 = vsub.f32 %v3093_v6, %v788_v18 }
  0xcc   : > { %v786_v22 = vpop.xlane.xlu0 %785 }
  0xcd   : > { %v802_v23 = vsub.f32 %v798_v21, %v800_v20  ;;  %v789_v24 = vmul.f32 0.03125, %v786_v22 }
  0xce   : > { %v797_v25 = vpop.xlane.xlu1 %796 }
  0xcf   : > { %v806_v26 = vadd.f32 1e-05, %v802_v23  ;;  %v801_v27 = vmul.f32 %v789_v24, %v789_v24  ;;  %v799_v28 = vmul.f32 0.03125, %v797_v25  ;;  %v805_v35 = vsub.f32 %v3095_v7, %v789_v24 }
  0xd1   : > { %2772 = vrsqrt.f32 %v806_v26  ;;  %v803_v29 = vsub.f32 %v799_v28, %v801_v27 }
  0xd3   : > { %v807_v30 = vadd.f32 1e-05, %v803_v29 }
  0xd5   : > { %2774 = vrsqrt.f32 %v807_v30 }
  0xdb   : > { %v2773_v32 = vpop.eup %2772 }
  0xdc   : > { %v810_v33 = vmul.f32 %v2773_v32, %v804_v31 }
  0xde   : > { %v818_v38 = vmul.f32 %v2440_v34, %v810_v33 }
  0xdf   : > { %v2775_v36 = vpop.eup %2774 }
  0xe0   : > { %v811_v37 = vmul.f32 %v2775_v36, %v805_v35  ;;  %v826_v41 = vadd.f32 %v2441_v39, %v818_v38 }
  0xe2   : > { %v819_v40 = vmul.f32 %v2440_v34, %v811_v37 }
  0xe4   : > { %v827_v42 = vadd.f32 %v2441_v39, %v819_v40 }
  0xe6   : > { %v828_v43 = vpack.c.bf16 %v827_v42, %v826_v41 }
  0xe8   : > { %2564 = vmatmul.mubr.msk.bf16.vlgmr.msra.gmra.mrb[0].mxu0 %vm780_vm1, %v828_v43 }
  0xe9   : > { %2569 = vmatprep.mubr.msk.bf16.mxu0 %vm2890_vm2, %v2889_v15 }
 0x1bb   : > { %v889_v45 = vpop.f32.mrb[0].mxu0 }
 0x1bc   : > { %v890_v46 = vadd.f32 %v2442_v44, %v889_v45  ;;  %v2565_v47 = vpop.f32.mrb[1].mxu0 }
 0x1bd   : > { %v892_v48 = vpop.f32.mrb[2].mxu0 }
 0x1be   : > { %v3137_v49 = vpack.c.bf16 %v890_v46, %v890_v46  ;;  %v893_v50 = vadd.f32 %v2442_v44, %v892_v48  ;;  %v2566_v51 = vpop.f32.mrb[3].mxu0 }
 0x1c0   : > { %v3139_v52 = vpack.c.bf16 %v893_v50, %v893_v50  ;;  %902 = vrot.lane.b32.xlu0 %v3137_v49, %s2891_s2 }
 0x1c2   : > { %951 = vrot.lane.b32.xlu1 %v3139_v52, %s2891_s2  ;;  %s2905_s2 = smov 24  }
 0x232   : > { %v903_v53 = vpop.permute.xlu0 %902 }
 0x233   : > { %v909_v54 = vsel %vm904_vm3, %v903_v53, 0 }
 0x234   : > { %2568 = vmatpush3.bf16.xpose.msra.mxu0 %v909_v54  ;;  %v952_v55 = vpop.permute.xlu1 %951 }
 0x235   : > { %2573 = vmatprep.subr.bf16.mxu0 %v2889_v15  ;;  %v957_v56 = vsel %vm904_vm3, %v952_v55, 0 }
 0x23b   : > { %2570 = vmatmul.mubr.msk.bf16.vlgmr.msra.gmra.mrb[4].mxu0 %vm904_vm3, %v3137_v49 }
 0x23c   : > { %2574 = vmatpush3.bf16.xpose.msra.mxu0 %v957_v56  ;;  %2575 = vmatprep.mubr.msk.bf16.mxu0 %vm2890_vm2, %v2889_v15 }
 0x23d   : > { %2585 = vmatprep.subr.bf16.mxu0 %v2889_v15 }
 0x243   : > { %2576 = vmatmul.mubr.msk.bf16.vlgmr.msra.gmra.mrb[8].mxu0 %vm904_vm3, %v3139_v52 }
 0x244   : > { %2587 = vmatprep.mubr.msk.bf16.mxu0 %vm2890_vm2, %v2889_v15 }
 0x30e   : > { %v945_v62 = vpop.f32.mrb[4].mxu0 }
 0x30f   : > { %v946_v63 = vadd.f32 %v945_v62, %v3155_v61  ;;  %v2571_v0 = vpop.f32.mrb[5].mxu0 }
 0x310   : > { %v948_v1 = vpop.f32.mrb[6].mxu0 }
 0x311   : > { %v2572_v2 = vpop.f32.mrb[7].mxu0  ;;  %v999_v3 = vsel %vm904_vm3, %v946_v63, -inf }
 0x312   : > { %1000 = vmax.xlane.f32.xlu1 %v999_v3 }
 0x316   : > { %v993_v4 = vpop.f32.mrb[8].mxu0 }
 0x317   : > { %v994_v5 = vadd.f32 %v993_v4, %v3155_v61  ;;  %v2577_v8 = vpop.f32.mrb[9].mxu0 }
 0x318   : > { %v996_v9 = vpop.f32.mrb[10].mxu0 }
 0x319   : > { %v2578_v10 = vpop.f32.mrb[11].mxu0  ;;  %v1002_v11 = vsel %vm904_vm3, %v994_v5, -inf }
 0x31a   : > { %1003 = vmax.xlane.f32.xlu0 %v1002_v11 }
 0x323   : > { %1072 = vrot.lane.b32.xlu1 %v3139_v52, %s2893_s23 }
 0x327   : > { %1124 = vrot.lane.b32.xlu1 %v3137_v49, %s2894_s18 }
 0x39f   : > { %v1001_v12 = vpop.xlane.xlu1 %1000 }
 0x3a0   : > { %v1005_v13 = vsub.f32 %v946_v63, %v1001_v12 }
 0x3a2   : > { %v1007_v14 = vmul.f32 1.442695, %v1005_v13 }
 0x3a3   : > { %v1073_v16 = vpop.permute.xlu1 %1072 }
 0x3a4   : > { %2776 = vpow2.f32 %v1007_v14  ;;  %v1078_v17 = vsel %vm1028_vm5, %v1073_v16, 0 }
 0x3a5   : > { %2586 = vmatpush3.bf16.msra.mxu0 %v1078_v17 }
 0x3a6   : > { %2597 = vmatprep.subr.bf16.mxu0 %v2889_v15 }
 0x3a7   : > { %v1004_v18 = vpop.xlane.xlu0 %1003  ;;  %v1125_v26 = vpop.permute.xlu1 %1124 }
 0x3a8   : > { %v1006_v19 = vsub.f32 %v994_v5, %v1004_v18  ;;  %v1130_v33 = vsel %vm904_vm3, %v1125_v26, 0 }
 0x3aa   : > { %v1009_v20 = vmul.f32 1.442695, %v1006_v19 }
 0x3ac   : > { %2778 = vpow2.f32 %v1009_v20 }
 0x3ae   : > { %v2777_v21 = vpop.eup %2776 }
 0x3af   : > { %v1011_v22 = vsel %vm904_vm3, %v2777_v21, 0.0 }
 0x3b0   : > { %1012 = vadd.xlane.f32.xlu0 %v1011_v22 }
 0x3b6   : > { %v2779_v23 = vpop.eup %2778 }
 0x3b7   : > { %v1014_v24 = vsel %vm904_vm3, %v2779_v23, 0.0 }
 0x3b8   : > { %1015 = vadd.xlane.f32.xlu1 %v1014_v24 }
 0x3c6   : > { %1023 = vrot.lane.b32.xlu0 %v3137_v49, %s2893_s23 }
 0x3c9   : > { %1174 = vrot.lane.b32.xlu1 %v3139_v52, %s2894_s18  ;;  %s3453_s18 = scalar_lea.vmem %s3414_s7, %s3030_s22  ;;  %s2485_s22 = sld [smem:[#allocation5 + $0x1]] (!%p2484_p11) }
 0x3ca   : > { %1122 = vrot.lane.b32.xlu0 %v3137_v49, %s2895_s14 }
 0x3cd   : > { %1172 = vrot.lane.b32.xlu1 %v3139_v52, %s2895_s14 }
 0x43d   : > { %v1013_v25 = vpop.xlane.xlu0 %1012 }
 0x43e   : > { %2780 = vrcp.f32 %v1013_v25 }
 0x441   : > { %v1024_v27 = vpop.permute.xlu0 %1023 }
 0x442   : > { %v1030_v28 = vsel %vm1028_vm5, %v1024_v27, 0 }
 0x443   : > { %2580 = vmatpush3.bf16.msra.mxu1 %v1030_v28 }
 0x444   : > { %2591 = vmatprep.subr.bf16.mxu1 %v2889_v15 }
 0x445   : > { %v1016_v29 = vpop.xlane.xlu1 %1015  ;;  %v1123_v38 = vpop.permute.xlu0 %1122 }
 0x446   : > { %2782 = vrcp.f32 %v1016_v29 }
 0x448   : > { %v2781_v30 = vpop.eup %2780 }
 0x449   : > { %v1019_v31 = vmul.f32 %v2781_v30, %v2777_v21  ;;  %v1175_v36 = vpop.permute.xlu1 %1174 }
 0x44a   : > { %v1180_v39 = vsel %vm904_vm3, %v1175_v36, 0 }
 0x44b   : > { %v1021_v32 = vpack.c.bf16 %v1019_v31, %v1019_v31 }
 0x44d   : > { %2582 = vmatmul.mubr.msk.bf16.vlgmr.msra.gmra.mrb[0].mxu1 %vm904_vm3, %v1021_v32  ;;  %v1173_v40 = vpop.permute.xlu1 %1172 }
 0x44e   : > { %2592 = vmatpush3.bf16.xpose.msra.mxu1 %v1130_v33  ;;  %2593 = vmatprep.mubr.msk.bf16.mxu1 %vm2890_vm2, %v2889_v15 }
 0x44f   : > { %2603 = vmatprep.subr.bf16.mxu1 %v2889_v15 }
 0x450   : > { %v2783_v34 = vpop.eup %2782 }
 0x451   : > { %v1020_v35 = vmul.f32 %v2783_v34, %v2779_v23 }
 0x453   : > { %v1022_v37 = vpack.c.bf16 %v1020_v35, %v1020_v35 }
 0x455   : > { %2588 = vmatmul.mubr.msk.bf16.vlgmr.msra.gmra.mrb[12].mxu0 %vm904_vm3, %v1022_v37  ;;  %2594 = vmatmul.mubr.msk.bf16.vlgmr.msra.gmra.mrb[4].mxu1 %vm904_vm3, %v1123_v38 }
 0x456   : > { %2598 = vmatpush3.bf16.xpose.msra.mxu0 %v1180_v39  ;;  %2599 = vmatprep.mubr.msk.bf16.mxu0 %vm2890_vm2, %v2889_v15 }
 0x457   : > { %2609 = vmatprep.subr.bf16.mxu0 %v2889_v15  ;;  %2605 = vmatprep.mubr.msk.bf16.mxu1 %vm2890_vm2, %v2889_v15 }
 0x45d   : > { %2600 = vmatmul.mubr.msk.bf16.vlgmr.msra.gmra.mrb[16].mxu0 %vm904_vm3, %v1173_v40 }
 0x45e   : > { %2611 = vmatprep.mubr.msk.bf16.mxu0 %vm2890_vm2, %v2889_v15 }
 0x520   : > { %v1066_v41 = vpop.f32.mrb[0].mxu1 }
 0x521   : > { %1120 = vst.msk [vmem:[#allocation3] sm:$0xff] %vm904_vm3, %v1066_v41  ;;  %v2583_v42 = vpop.f32.mrb[1].mxu1 }
 0x522   : > { %v1069_v43 = vpop.f32.mrb[2].mxu1 }
 0x523   : > { %v2584_v44 = vpop.f32.mrb[3].mxu1 }
 0x528   : > { %v1114_v45 = vpop.f32.mrb[12].mxu0  ;;  %v1166_v46 = vpop.f32.mrb[4].mxu1 }
 0x529   : > { %1121 = vst.msk [vmem:[#allocation3 + $0x8] sm:$0xff] %vm904_vm3, %v1114_v45  ;;  %v1167_v47 = vadd.f32 %v1166_v46, %v3155_v61  ;;  %v2589_v48 = vpop.f32.mrb[13].mxu0  ;;  %v2595_v50 = vpop.f32.mrb[5].mxu1 }
 0x52a   : > { %v1117_v51 = vpop.f32.mrb[14].mxu0  ;;  %v1169_v53 = vpop.f32.mrb[6].mxu1 }
 0x52b   : > { %v2590_v54 = vpop.f32.mrb[15].mxu0  ;;  %v2596_v55 = vpop.f32.mrb[7].mxu1  ;;  %v1222_v56 = vsel %vm904_vm3, %v1167_v47, -inf }
 0x52c   : > { %1223 = vmax.xlane.f32.xlu0 %v1222_v56 }
 0x530   : > { %v1216_v57 = vpop.f32.mrb[16].mxu0 }
 0x531   : > { %v1217_v58 = vadd.f32 %v1216_v57, %v3155_v61  ;;  %v2601_v59 = vpop.f32.mrb[17].mxu0 }
 0x532   : > { %v1219_v60 = vpop.f32.mrb[18].mxu0 }
 0x533   : > { %v2602_v62 = vpop.f32.mrb[19].mxu0  ;;  %v1225_v63 = vsel %vm904_vm3, %v1217_v58, -inf }
 0x534   : > { %1226 = vmax.xlane.f32.xlu1 %v1225_v63 }
 0x545   : > { %1294 = vrot.lane.b32.xlu1 %v3139_v52, %s2896_s21 }
 0x549   : > { %1355 = vrot.lane.b32.xlu1 %v3137_v49, %s2897_s26 }
 0x54d   : > { %1405 = vrot.lane.b32.xlu1 %v3139_v52, %s2897_s26 }
 0x551   : > { %1403 = vrot.lane.b32.xlu1 %v3139_v52, %s2898_s1 }
 0x5b9   : > { %v1224_v0 = vpop.xlane.xlu0 %1223 }
 0x5ba   : > { %v1228_v1 = vsub.f32 %v1167_v47, %v1224_v0 }
 0x5bc   : > { %v1230_v2 = vmul.f32 1.442695, %v1228_v1 }
 0x5be   : > { %2784 = vpow2.f32 %v1230_v2 }
 0x5c1   : > { %v1227_v3 = vpop.xlane.xlu1 %1226 }
 0x5c2   : > { %v1229_v4 = vsub.f32 %v1217_v58, %v1227_v3 }
 0x5c4   : > { %v1232_v5 = vmul.f32 1.442695, %v1229_v4 }
 0x5c5   : > { %v1295_v8 = vpop.permute.xlu1 %1294 }
 0x5c6   : > { %2786 = vpow2.f32 %v1232_v5  ;;  %v1300_v9 = vsel %vm1028_vm5, %v1295_v8, 0 }
 0x5c7   : > { %2610 = vmatpush3.bf16.msra.mxu0 %v1300_v9 }
 0x5c8   : > { %v2785_v10 = vpop.eup %2784  ;;  %2621 = vmatprep.subr.bf16.mxu0 %v2889_v15 }
 0x5c9   : > { %v1234_v11 = vsel %vm904_vm3, %v2785_v10, 0.0  ;;  %v1356_v22 = vpop.permute.xlu1 %1355 }
 0x5ca   : > { %1235 = vadd.xlane.f32.xlu0 %v1234_v11  ;;  %v1361_v26 = vsel %vm904_vm3, %v1356_v22, 0 }
 0x5cd   : > { %v1406_v25 = vpop.permute.xlu1 %1405 }
 0x5ce   : > { %v1411_v28 = vsel %vm904_vm3, %v1406_v25, 0 }
 0x5d0   : > { %v2787_v12 = vpop.eup %2786 }
 0x5d1   : > { %v1237_v13 = vsel %vm904_vm3, %v2787_v12, 0.0  ;;  %v1404_v30 = vpop.permute.xlu1 %1403 }
 0x5d2   : > { %1238 = vadd.xlane.f32.xlu0 %v1237_v13 }
 0x5e8   : > { %1246 = vrot.lane.b32.xlu0 %v3137_v49, %s2896_s21 }
 0x5ec   : > { %1353 = vrot.lane.b32.xlu0 %v3137_v49, %s2898_s1  ;;  %s2134_s1 = sld [smem:[#allocation5]] (!%p2484_p11) }
 0x657   : > { %v1236_v14 = vpop.xlane.xlu0 %1235 }
 0x658   : > { %2788 = vrcp.f32 %v1236_v14 }
 0x65f   : > { %v1239_v16 = vpop.xlane.xlu0 %1238 }
 0x660   : > { %2790 = vrcp.f32 %v1239_v16 }
 0x662   : > { %v2789_v17 = vpop.eup %2788 }
 0x663   : > { %v1242_v18 = vmul.f32 %v2789_v17, %v2785_v10  ;;  %v1247_v19 = vpop.permute.xlu0 %1246 }
 0x664   : > { %v1252_v20 = vsel %vm1028_vm5, %v1247_v19, 0 }
 0x665   : > { %2604 = vmatpush3.bf16.msra.mxu1 %v1252_v20  ;;  %v1244_v21 = vpack.c.bf16 %v1242_v18, %v1242_v18 }
 0x666   : > { %2615 = vmatprep.subr.bf16.mxu1 %v2889_v15 }
 0x667   : > { %v1354_v29 = vpop.permute.xlu0 %1353 }
 0x668   : > { %2606 = vmatmul.mubr.msk.bf16.vlgmr.msra.gmra.mrb[8].mxu1 %vm904_vm3, %v1244_v21 }
 0x669   : > { %2617 = vmatprep.mubr.msk.bf16.mxu1 %vm2890_vm2, %v2889_v15 }
 0x66a   : > { %v2791_v23 = vpop.eup %2790 }
 0x66b   : > { %v1243_v24 = vmul.f32 %v2791_v23, %v2787_v12 }
 0x66d   : > { %v1245_v27 = vpack.c.bf16 %v1243_v24, %v1243_v24 }
 0x66e   : > { %2616 = vmatpush3.bf16.xpose.msra.mxu1 %v1361_v26 }
 0x66f   : > { %2612 = vmatmul.mubr.msk.bf16.vlgmr.msra.gmra.mrb[20].mxu0 %vm904_vm3, %v1245_v27  ;;  %2627 = vmatprep.subr.bf16.mxu1 %v2889_v15 }
 0x670   : > { %2622 = vmatpush3.bf16.xpose.msra.mxu0 %v1411_v28  ;;  %2623 = vmatprep.mubr.msk.bf16.mxu0 %vm2890_vm2, %v2889_v15 }
 0x671   : > { %2633 = vmatprep.subr.bf16.mxu0 %v2889_v15 }
 0x675   : > { %2618 = vmatmul.mubr.msk.bf16.vlgmr.msra.gmra.mrb[12].mxu1 %vm904_vm3, %v1354_v29 }
 0x676   : > { %2629 = vmatprep.mubr.msk.bf16.mxu1 %vm2890_vm2, %v2889_v15 }
 0x677   : > { %2624 = vmatmul.mubr.msk.bf16.vlgmr.msra.gmra.mrb[24].mxu0 %vm904_vm3, %v1404_v30 }
 0x678   : > { %2635 = vmatprep.mubr.msk.bf16.mxu0 %vm2890_vm2, %v2889_v15 }
 0x73b   : > { %v3223_v31 = vpop.f32.mrb[8].mxu1 }
 0x73c   : > { %v2607_v32 = vpop.f32.mrb[9].mxu1 }
 0x73d   : > { %v1291_v33 = vpop.f32.mrb[10].mxu1 }
 0x73e   : > { %v2608_v34 = vpop.f32.mrb[11].mxu1 }
 0x742   : > { %v3225_v35 = vpop.f32.mrb[20].mxu0 }
 0x743   : > { %v2613_v36 = vpop.f32.mrb[21].mxu0 }
 0x744   : > { %v1339_v37 = vpop.f32.mrb[22].mxu0 }
 0x745   : > { %v2614_v38 = vpop.f32.mrb[23].mxu0 }
 0x748   : > { %v1397_v39 = vpop.f32.mrb[12].mxu1 }
 0x749   : > { %v1398_v40 = vadd.f32 %v1397_v39, %v3155_v61  ;;  %v2619_v41 = vpop.f32.mrb[13].mxu1 }
 0x74a   : > { %v1400_v42 = vpop.f32.mrb[14].mxu1  ;;  %v1447_v43 = vpop.f32.mrb[24].mxu0 }
 0x74b   : > { %v1448_v44 = vadd.f32 %v1447_v43, %v3155_v61  ;;  %v2620_v45 = vpop.f32.mrb[15].mxu1  ;;  %v2625_v46 = vpop.f32.mrb[25].mxu0  ;;  %v1453_v47 = vsel %vm904_vm3, %v1398_v40, -inf }
 0x74c   : > { %1454 = vmax.xlane.f32.xlu0 %v1453_v47  ;;  %v1450_v48 = vpop.f32.mrb[26].mxu0 }
 0x74d   : > { %v2626_v50 = vpop.f32.mrb[27].mxu0  ;;  %v1456_v51 = vsel %vm904_vm3, %v1448_v44, -inf }
 0x74e   : > { %1457 = vmax.xlane.f32.xlu1 %v1456_v51 }
 0x75f   : > { %1525 = vrot.lane.b32.xlu1 %v3139_v52, %s2899_s25 }
 0x763   : > { %1586 = vrot.lane.b32.xlu1 %v3137_v49, %s2900_s24 }
 0x767   : > { %1636 = vrot.lane.b32.xlu1 %v3139_v52, %s2900_s24 }
 0x76b   : > { %1634 = vrot.lane.b32.xlu1 %v3139_v52, %s2901_s28 }
 0x7d9   : > { %v1455_v53 = vpop.xlane.xlu0 %1454 }
 0x7da   : > { %v1459_v54 = vsub.f32 %v1398_v40, %v1455_v53 }
 0x7db   : > { %v1458_v55 = vpop.xlane.xlu1 %1457 }
 0x7dc   : > { %v1461_v56 = vmul.f32 1.442695, %v1459_v54  ;;  %v1460_v57 = vsub.f32 %v1448_v44, %v1458_v55 }
 0x7de   : > { %2792 = vpow2.f32 %v1461_v56  ;;  %v1463_v58 = vmul.f32 1.442695, %v1460_v57 }
 0x7df   : > { %v1526_v59 = vpop.permute.xlu1 %1525 }
 0x7e0   : > { %2794 = vpow2.f32 %v1463_v58  ;;  %v1531_v60 = vsel %vm1028_vm5, %v1526_v59, 0 }
 0x7e1   : > { %2634 = vmatpush3.bf16.msra.mxu0 %v1531_v60 }
 0x7e2   : > { %2645 = vmatprep.subr.bf16.mxu0 %v2889_v15 }
 0x7e3   : > { %v1587_v9 = vpop.permute.xlu1 %1586 }
 0x7e4   : > { %v1592_v16 = vsel %vm904_vm3, %v1587_v9, 0 }
 0x7e7   : > { %v1637_v14 = vpop.permute.xlu1 %1636 }
 0x7e8   : > { %v2793_v62 = vpop.eup %2792  ;;  %v1642_v18 = vsel %vm904_vm3, %v1637_v14, 0 }
 0x7e9   : > { %v1465_v63 = vsel %vm904_vm3, %v2793_v62, 0.0 }
 0x7ea   : > { %v2795_v0 = vpop.eup %2794  ;;  %1466 = vadd.xlane.f32.xlu0 %v1465_v63 }
 0x7eb   : > { %v1468_v1 = vsel %vm904_vm3, %v2795_v0, 0.0  ;;  %v1635_v20 = vpop.permute.xlu1 %1634 }
 0x7ee   : > { %1469 = vadd.xlane.f32.xlu0 %v1468_v1 }
 0x804   : > { %1477 = vrot.lane.b32.xlu0 %v3137_v49, %s2899_s25  ;;  %s2321_s25 = scalar_lea.vmem (!%p2484_p11), [#allocation2], %s2485_s22 }
 0x808   : > { %1584 = vrot.lane.b32.xlu0 %v3137_v49, %s2901_s28 }
 0x877   : > { %v1467_v2 = vpop.xlane.xlu0 %1466 }
 0x878   : > { %2796 = vrcp.f32 %v1467_v2 }
 0x87b   : > { %v1470_v3 = vpop.xlane.xlu0 %1469 }
 0x87c   : > { %2798 = vrcp.f32 %v1470_v3  ;;  %v2760_v3 = vld [vmem:[%s3053_s20] sm:$0xff]  }
 0x87f   : > { %v1478_v4 = vpop.permute.xlu0 %1477 }
 0x880   : > { %v1483_v5 = vsel %vm1028_vm5, %v1478_v4, 0  ;;  %v2761_v4 = vld [vmem:[%s3053_s20 + $0x8] sm:$0xff]   ;;  %s3455_s20 = sld [smem:[#allocation19_spill]] (!%p2484_p11) }
 0x881   : > { %2628 = vmatpush3.bf16.msra.mxu1 %v1483_v5 }
 0x882   : > { %v2797_v8 = vpop.eup %2796  ;;  %2639 = vmatprep.subr.bf16.mxu1 %v2889_v15 }
 0x883   : > { %v1473_v10 = vmul.f32 %v2797_v8, %v2793_v62  ;;  %v1585_v19 = vpop.permute.xlu0 %1584 }
 0x885   : > { %v1475_v11 = vpack.c.bf16 %v1473_v10, %v1473_v10 }
 0x886   : > { %v2799_v12 = vpop.eup %2798 }
 0x887   : > { %v1474_v13 = vmul.f32 %v2799_v12, %v2795_v0  ;;  %2630 = vmatmul.mubr.msk.bf16.vlgmr.msra.gmra.mrb[16].mxu1 %vm904_vm3, %v1475_v11 }
 0x888   : > { %2641 = vmatprep.mubr.msk.bf16.mxu1 %vm2890_vm2, %v2889_v15 }
 0x889   : > { %v1476_v17 = vpack.c.bf16 %v1474_v13, %v1474_v13 }
 0x88a   : > { %2640 = vmatpush3.bf16.xpose.msra.mxu1 %v1592_v16 }
 0x88b   : > { %2636 = vmatmul.mubr.msk.bf16.vlgmr.msra.gmra.mrb[28].mxu0 %vm904_vm3, %v1476_v17  ;;  %2651 = vmatprep.subr.bf16.mxu1 %v2889_v15 }
 0x88c   : > { %2646 = vmatpush3.bf16.xpose.msra.mxu0 %v1642_v18  ;;  %2647 = vmatprep.mubr.msk.bf16.mxu0 %vm2890_vm2, %v2889_v15 }
 0x88d   : > { %2657 = vmatprep.subr.bf16.mxu0 %v2889_v15 }
 0x891   : > { %2642 = vmatmul.mubr.msk.bf16.vlgmr.msra.gmra.mrb[20].mxu1 %vm904_vm3, %v1585_v19 }
 0x892   : > { %2653 = vmatprep.mubr.msk.bf16.mxu1 %vm2890_vm2, %v2889_v15 }
 0x893   : > { %2648 = vmatmul.mubr.msk.bf16.vlgmr.msra.gmra.mrb[32].mxu0 %vm904_vm3, %v1635_v20 }
 0x894   : > { %2659 = vmatprep.mubr.msk.bf16.mxu0 %vm2890_vm2, %v2889_v15 }
 0x95a   : > { %v1519_v21 = vpop.f32.mrb[16].mxu1 }
 0x95b   : > { %v2631_v22 = vpop.f32.mrb[17].mxu1 }
 0x95c   : > { %v1522_v23 = vpop.f32.mrb[18].mxu1 }
 0x95d   : > { %v2632_v24 = vpop.f32.mrb[19].mxu1 }
 0x95e   : > { %v1567_v25 = vpop.f32.mrb[28].mxu0 }
 0x95f   : > { %v2637_v26 = vpop.f32.mrb[29].mxu0 }
 0x960   : > { %v1570_v27 = vpop.f32.mrb[30].mxu0 }
 0x961   : > { %v2638_v28 = vpop.f32.mrb[31].mxu0 }
 0x964   : > { %v1628_v29 = vpop.f32.mrb[20].mxu1 }
 0x965   : > { %v1629_v30 = vadd.f32 %v1628_v29, %v3155_v61  ;;  %v2643_v32 = vpop.f32.mrb[21].mxu1 }
 0x966   : > { %v1631_v33 = vpop.f32.mrb[22].mxu1  ;;  %v1678_v34 = vpop.f32.mrb[32].mxu0 }
 0x967   : > { %v1679_v36 = vadd.f32 %v1678_v34, %v3155_v61  ;;  %v2644_v37 = vpop.f32.mrb[23].mxu1  ;;  %v2649_v38 = vpop.f32.mrb[33].mxu0  ;;  %v1684_v39 = vsel %vm904_vm3, %v1629_v30, -inf }
 0x968   : > { %1685 = vmax.xlane.f32.xlu0 %v1684_v39  ;;  %v1681_v40 = vpop.f32.mrb[34].mxu0  ;;  %v2763_v37 = vld [vmem:[%s3070_s4 + $0x8] sm:$0xff]  }
 0x969   : > { %v2650_v41 = vpop.f32.mrb[35].mxu0  ;;  %v1687_v42 = vsel %vm904_vm3, %v1679_v36, -inf }
 0x96a   : > { %1688 = vmax.xlane.f32.xlu1 %v1687_v42 }
 0x97b   : > { %1756 = vrot.lane.b32.xlu1 %v3139_v52, %s2902_s27 }
 0x97f   : > { %1344 = vrot.lane.b32.xlu1 %v3223_v31, %s2903_s0 }
 0x983   : > { %1346 = vrot.lane.b32.xlu1 %v3225_v35, %s2903_s0 }
 0x987   : > { %1577 = vrot.lane.b32.xlu1 %v1567_v25, %s2904_s29 }
 0x9f5   : > { %v1686_v61 = vpop.xlane.xlu0 %1685 }
 0x9f6   : > { %v1690_v43 = vsub.f32 %v1629_v30, %v1686_v61 }
 0x9f7   : > { %v1689_v44 = vpop.xlane.xlu1 %1688 }
 0x9f8   : > { %v1692_v45 = vmul.f32 1.442695, %v1690_v43  ;;  %v1691_v46 = vsub.f32 %v1679_v36, %v1689_v44  ;;  %v2762_v36 = vld [vmem:[%s3070_s4] sm:$0xff]   ;;  %s3456_s4 = sld [smem:[#allocation20_spill]] (!%p2484_p11) }
 0x9fa   : > { %2800 = vpow2.f32 %v1692_v45  ;;  %v1694_v47 = vmul.f32 1.442695, %v1691_v46 }
 0x9fb   : > { %v1757_v48 = vpop.permute.xlu1 %1756 }
 0x9fc   : > { %2802 = vpow2.f32 %v1694_v47  ;;  %v1762_v50 = vsel %vm1028_vm5, %v1757_v48, 0 }
 0x9fd   : > { %2658 = vmatpush3.bf16.msra.mxu0 %v1762_v50 }
 0x9fe   : > { %2671 = vmatprep.subr.bf16.mxu0 %v2889_v15 }
 0x9ff   : > { %v1345_v52 = vpop.permute.xlu1 %1344 }
 0xa00   : > { %1351 = vst.msk [vmem:[#allocation3] sm:$0xff] %vm1350_vm6, %v1345_v52 }
 0xa03   : > { %v1347_v31 = vpop.permute.xlu1 %1346 }
 0xa04   : > { %v2801_v35 = vpop.eup %2800  ;;  %1352 = vst.msk [vmem:[#allocation3 + $0x8] sm:$0xff] %vm1350_vm6, %v1347_v31 }
 0xa05   : > { %v1696_v51 = vsel %vm904_vm3, %v2801_v35, 0.0 }
 0xa06   : > { %v2803_v53 = vpop.eup %2802  ;;  %1697 = vadd.xlane.f32.xlu0 %v1696_v51 }
 0xa07   : > { %v1578_v54 = vpop.permute.xlu1 %1577  ;;  %v1699_v55 = vsel %vm904_vm3, %v2803_v53, 0.0 }
 0xa08   : > { %1583 = vst.msk [vmem:[#allocation3 + $0x8] sm:$0xff] %vm1581_vm7, %v1578_v54 }
 0xa0a   : > { %1700 = vadd.xlane.f32.xlu0 %v1699_v55 }
 0xa20   : > { %1708 = vrot.lane.b32.xlu0 %v3137_v49, %s2902_s27  ;;  %s3454_s27 = sld [smem:[#allocation21_spill]] (!%p2484_p11) }
 0xa24   : > { %1575 = vrot.lane.b32.xlu0 %v1519_v21, %s2904_s29  ;;  %v2464_v21 = vld [vmem:[%s3453_s18] ss:$0 sm:$0xff] }
 0xa93   : > { %v1698_v56 = vpop.xlane.xlu0 %1697 }
 0xa94   : > { %2804 = vrcp.f32 %v1698_v56 }
 0xa97   : > { %v1701_v57 = vpop.xlane.xlu0 %1700 }
 0xa98   : > { %2806 = vrcp.f32 %v1701_v57 }
 0xa9b   : > { %v1709_v58 = vpop.permute.xlu0 %1708 }
 0xa9c   : > { %v1714_v59 = vsel %vm1028_vm5, %v1709_v58, 0  ;;  %v2469_v58 = vld [vmem:[%s736_s12] ss:$0 sm:$0xff] }
 0xa9d   : > { %2652 = vmatpush3.bf16.msra.mxu1 %v1714_v59 }
 0xa9e   : > { %v2805_v60 = vpop.eup %2804  ;;  %2663 = vmatprep.subr.bf16.mxu1 %v2889_v15 }
 0xa9f   : > { %v1704_v62 = vmul.f32 %v2805_v60, %v2801_v35  ;;  %v1576_v63 = vpop.permute.xlu0 %1575 }
 0xaa0   : > { %1582 = vst.msk [vmem:[#allocation3] sm:$0xff] %vm1581_vm7, %v1576_v63 }
 0xaa1   : > { %v1706_v0 = vpack.c.bf16 %v1704_v62, %v1704_v62 }
 0xaa2   : > { %v2807_v49 = vpop.eup %2806 }
 0xaa3   : > { %v1705_v1 = vmul.f32 %v2807_v49, %v2803_v53  ;;  %2654 = vmatmul.mubr.msk.bf16.vlgmr.msra.gmra.mrb[24].mxu1 %vm904_vm3, %v1706_v0  ;;  %v2468_v53 = vld [vmem:[%s733_s15] ss:$0 sm:$0xff]  ;;  %v2765_v49 = vld [vmem:[%s3080_s16 + $0x8] sm:$0xff]  }
 0xaa4   : > { %2667 = vmatprep.mubr.msk.bf16.mxu1 %vm2890_vm2, %v2889_v15  ;;  %2664 = vmatpush3.bf16.msra.mxu1 %v2760_v3  ;;  %v2764_v0 = vld [vmem:[%s3080_s16] sm:$0xff]  }
 0xaa5   : > { %v1707_v2 = vpack.c.bf16 %v1705_v1, %v1705_v1  ;;  %2665 = vmatprep.subr.bf16.mxu1 %v2889_v15  ;;  %v2766_v1 = vld [vmem:[%s3080_s16 + $0x10] sm:$0xff]   ;;  %v2768_v3 = vld [vmem:[%s3080_s16 + $0x20] sm:$0xff]  }
 0xaa7   : > { %2660 = vmatmul.mubr.msk.bf16.vlgmr.msra.gmra.mrb[36].mxu0 %vm904_vm3, %v1707_v2  ;;  %v2767_v2 = vld [vmem:[%s3080_s16 + $0x18] sm:$0xff]  }
 0xaa8   : > { %2675 = vmatprep.mubr.msk.bf16.mxu0 %vm2890_vm2, %v2889_v15  ;;  %2666 = vmatpush3.bf16.msra.mxu1 %v2761_v4  ;;  %v2769_v4 = vld [vmem:[%s3080_s16 + $0x28] sm:$0xff]  }
 0xaa9   : > { %2679 = vmatprep.subr.bf16.mxu1 %v2889_v15  ;;  %2672 = vmatpush3.bf16.msra.mxu0 %v2762_v36 }
 0xaaa   : > { %2673 = vmatprep.subr.bf16.mxu0 %v2889_v15 }
 0xaad   : > { %2674 = vmatpush3.bf16.msra.mxu0 %v2763_v37 }
 0xb76   : > { %v1750_v5 = vpop.f32.mrb[24].mxu1 }
 0xb77   : > { %1806 = vrot.lane.b32.xlu0 %v1750_v5, %s2905_s2  ;;  %v2655_v8 = vpop.f32.mrb[25].mxu1  ;;  %v2770_v5 = vld [vmem:[%s3080_s16 + $0x30] sm:$0xff]  }
 0xb78   : > { %v1753_v9 = vpop.f32.mrb[26].mxu1  ;;  %v2771_v8 = vld [vmem:[%s3080_s16 + $0x38] sm:$0xff]  }
 0xb79   : > { %v2656_v10 = vpop.f32.mrb[27].mxu1  ;;  %v2470_v9 = vld [vmem:[%s744_s6] ss:$0 sm:$0xff] }
 0xb7a   : > { %v1798_v11 = vpop.f32.mrb[36].mxu0 }
 0xb7b   : > { %1808 = vrot.lane.b32.xlu1 %v1798_v11, %s2905_s2  ;;  %v2661_v12 = vpop.f32.mrb[37].mxu0 }
 0xb7c   : > { %v1801_v13 = vpop.f32.mrb[38].mxu0 }
 0xb7d   : > { %v2662_v14 = vpop.f32.mrb[39].mxu0 }
 0xbe9   : > { %v1807_v16 = vpop.permute.xlu0 %1806 }
 0xbea   : > { %1813 = vst.msk [vmem:[#allocation3] sm:$0xff] %vm1812_vm8, %v1807_v16 }
 0xbed   : > { %v1809_v17 = vpop.permute.xlu1 %1808 }
 0xbee   : > { %1814 = vst.msk [vmem:[#allocation3 + $0x8] sm:$0xff] %vm1812_vm8, %v1809_v17 }
 0xbf1   : > { %v1815_v18 = vld [vmem:[#allocation3] sm:$0xff] }
 0xbf5   : > { %v1816_v19 = vld [vmem:[#allocation3 + $0x8] sm:$0xff] }
 0xbf6   : > { %v1817_v20 = vpack.c.bf16 %v1816_v19, %v1815_v18 }
 0xbf8   : > { %2668 = vmatmul.mubr.msk.bf16.vlgmr.msra.gmra.mrb[28].mxu1 %vm780_vm1, %v1817_v20 }
 0xbf9   : > { %2695 = vmatprep.mubr.msk.bf16.mxu1 %vm2890_vm2, %v2889_v15  ;;  %2680 = vmatpush3.bf16.msra.mxu1 %v2764_v0 }
 0xbfa   : > { %2681 = vmatprep.subr.bf16.mxu1 %v2889_v15 }
 0xbfd   : > { %2682 = vmatpush3.bf16.msra.mxu1 %v2765_v49 }
 0xbfe   : > { %2683 = vmatprep.subr.bf16.mxu1 %v2889_v15 }
 0xc01   : > { %2684 = vmatpush3.bf16.msra.mxu1 %v2766_v1 }
 0xc02   : > { %2685 = vmatprep.subr.bf16.mxu1 %v2889_v15 }
 0xc05   : > { %2686 = vmatpush3.bf16.msra.mxu1 %v2767_v2 }
 0xc06   : > { %2687 = vmatprep.subr.bf16.mxu1 %v2889_v15 }
 0xc09   : > { %2688 = vmatpush3.bf16.msra.mxu1 %v2768_v3 }
 0xc0a   : > { %2689 = vmatprep.subr.bf16.mxu1 %v2889_v15 }
 0xc0d   : > { %2690 = vmatpush3.bf16.msra.mxu1 %v2769_v4 }
 0xc0e   : > { %2691 = vmatprep.subr.bf16.mxu1 %v2889_v15 }
 0xc11   : > { %2692 = vmatpush3.bf16.msra.mxu1 %v2770_v5 }
 0xc12   : > { %2693 = vmatprep.subr.bf16.mxu1 %v2889_v15 }
 0xc15   : > { %2694 = vmatpush3.bf16.msra.mxu1 %v2771_v8 }
 0xccb   : > { %v1878_v22 = vpop.f32.mrb[28].mxu1 }
 0xccc   : > { %v1879_v23 = vadd.f32 %v2464_v21, %v1878_v22  ;;  %v2669_v24 = vpop.f32.mrb[29].mxu1 }
 0xccd   : > { %v1881_v25 = vpop.f32.mrb[30].mxu1  ;;  %v2475_v24 = vld [vmem:[%s752_s30] ss:$0 sm:$0xff]  ;;  %s2135_s30 = scalar_lea.vmem (!%p2484_p11), [#allocation2], %s2134_s1 }
 0xcce   : > { %v3296_v26 = vadd.f32 %v1879_v23, %v3093_v6  ;;  %v1882_v27 = vadd.f32 %v2464_v21, %v1881_v25  ;;  %v2670_v28 = vpop.f32.mrb[31].mxu1 }
 0xcd0   : > { %v3299_v29 = vadd.f32 %v1882_v27, %v3095_v7  ;;  %v1889_v30 = vsel %vm780_vm1, %v3296_v26, 0.0  ;;  %v1897_v32 = vmul.f32 %v3296_v26, %v3296_v26 }
 0xcd1   : > { %1890 = vadd.xlane.f32.xlu0 %v1889_v30 }
 0xcd2   : > { %v1892_v33 = vsel %vm780_vm1, %v3299_v29, 0.0  ;;  %v1899_v6 = vsel %vm780_vm1, %v1897_v32, 0.0  ;;  %v1898_v34 = vmul.f32 %v3299_v29, %v3299_v29 }
 0xcd3   : > { %1893 = vadd.xlane.f32.xlu1 %v1892_v33 }
 0xcd4   : > { %v1902_v7 = vsel %vm780_vm1, %v1898_v34, 0.0 }
 0xcd5   : > { %1900 = vadd.xlane.f32.xlu0 %v1899_v6 }
 0xcd9   : > { %1903 = vadd.xlane.f32.xlu0 %v1902_v7 }
 0xd5e   : > { %v1891_v38 = vpop.xlane.xlu0 %1890 }
 0xd5f   : > { %v1895_v39 = vmul.f32 0.03125, %v1891_v38 }
 0xd60   : > { %v1894_v40 = vpop.xlane.xlu1 %1893 }
 0xd61   : > { %v1907_v42 = vmul.f32 %v1895_v39, %v1895_v39  ;;  %v1896_v61 = vmul.f32 0.03125, %v1894_v40  ;;  %v1911_v31 = vsub.f32 %v3296_v26, %v1895_v39 }
 0xd62   : > { %v1901_v41 = vpop.xlane.xlu0 %1900 }
 0xd63   : > { %v1905_v43 = vmul.f32 0.03125, %v1901_v41  ;;  %v1908_v46 = vmul.f32 %v1896_v61, %v1896_v61  ;;  %v1912_v54 = vsub.f32 %v3299_v29, %v1896_v61  ;;  %v2906_v41 = vmov (!%p2484_p11), 0.0  }
 0xd64   : > { %2699 = vmatprep.subr.bf16.mxu0 (!%p2484_p11), %v2906_v41 }
 0xd65   : > { %v1909_v44 = vsub.f32 %v1905_v43, %v1907_v42  ;;  %v2817_v42 = vld [vmem:[%s3454_s27 + $0x8] sm:$0xff] (!%p2484_p11)  }
 0xd66   : > { %v1904_v45 = vpop.xlane.xlu0 %1903 }
 0xd67   : > { %v1913_v47 = vadd.f32 1e-05, %v1909_v44  ;;  %v1906_v48 = vmul.f32 0.03125, %v1904_v45 }
 0xd69   : > { %2808 = vrsqrt.f32 %v1913_v47  ;;  %v1910_v50 = vsub.f32 %v1906_v48, %v1908_v46 }
 0xd6b   : > { %v1914_v52 = vadd.f32 1e-05, %v1910_v50 }
 0xd6d   : > { %2810 = vrsqrt.f32 %v1914_v52 }
 0xd73   : > { %v2809_v35 = vpop.eup %2808 }
 0xd74   : > { %v1917_v51 = vmul.f32 %v2809_v35, %v1911_v31  ;;  %v2487_v31 = vld [vmem:[%s3455_s20] ss:$0 sm:$0xff] (!%p2484_p11) }
 0xd76   : > { %v1925_v57 = vmul.f32 %v2468_v53, %v1917_v51  ;;  %v2488_v51 = vld [vmem:[%s3456_s4] ss:$0 sm:$0xff] (!%p2484_p11) }
 0xd77   : > { %v2811_v55 = vpop.eup %2810 }
 0xd78   : > { %v1918_v56 = vmul.f32 %v2811_v55, %v1912_v54  ;;  %v1933_v60 = vadd.f32 %v2469_v58, %v1925_v57 }
 0xd7a   : > { %v1926_v59 = vmul.f32 %v2468_v53, %v1918_v56 }
 0xd7c   : > { %v1934_v62 = vadd.f32 %v2469_v58, %v1926_v59 }
 0xd7e   : > { %v1935_v63 = vpack.c.bf16 %v1934_v62, %v1933_v60 }
 0xd80   : > { %2676 = vmatmul.mubr.msk.bf16.vlgmr.msra.gmra.mrb[40].mxu0 %vm780_vm1, %v1935_v63 }
 0xd81   : > { %2703 = vmatprep.mubr.msk.bf16.mxu0 (!%p2484_p11), %vm2907_vm11, %v2906_v41 }
 0xe53   : > { %v1996_v10 = vpop.f32.mrb[40].mxu0 }
 0xe54   : > { %v2677_v11 = vpop.f32.mrb[41].mxu0  ;;  %v1997_v13 = vadd.f32 %v2470_v9, %v1996_v10 }
 0xe55   : > { %v1999_v12 = vpop.f32.mrb[42].mxu0 }
 0xe56   : > { %v2000_v14 = vadd.f32 %v2470_v9, %v1999_v12  ;;  %v2678_v16 = vpop.f32.mrb[43].mxu0 }
 0xe58   : > { %v2003_v17 = vpack.c.bf16 %v2000_v14, %v1997_v13 }
 0xe5a   : > { %v2474_v18 = vmul.bf16 3218784218, %v2003_v17 }
 0xe5c   : > { %v2007_v19 = vmul.bf16 1069105081, %v2474_v18 }
 0xe5e   : > { %2812 = vpow.bf16 %v2007_v19 }
 0xe69   : > { %v2813_v20 = vpop.eup %2812 }
 0xe6a   : > { %v2009_v15 = vadd.bf16 1065369472, %v2813_v20 }
 0xe6c   : > { %2814 = vrcp.bf16 %v2009_v15 }
 0xe77   : > { %v2815_v21 = vpop.eup %2814 }
 0xe78   : > { %v2011_v22 = vmul.bf16 1065369472, %v2815_v21 }
 0xe7a   : > { %v2012_v23 = vmul.bf16 %v2011_v22, %v2003_v17 }
 0xe7c   : > { %2696 = vmatmul.mubr.bf16.vlgmr.msra.gmra.mrb[32].mxu1 %v2012_v23 }
 0xf4f   : > { %v2118_v25 = vpop.f32.mrb[32].mxu1 }
 0xf50   : > { %v2119_v27 = vadd.f32 %v2475_v24, %v2118_v25  ;;  %v2697_v28 = vpop.f32.mrb[33].mxu1  ;;  %2132 = sbr.rel (%p2484_p11) target bundleno = 4324 (0x10e4), region = 96 }
 0xf51   : > { %v2121_v30 = vpop.f32.mrb[34].mxu1 }
 0xf52   : > { %v2125_v32 = vadd.f32 %v2119_v27, %v3296_v26  ;;  %v2122_v33 = vadd.f32 %v2475_v24, %v2121_v30  ;;  %v2698_v6 = vpop.f32.mrb[35].mxu1 }
 0xf54   : > { %2127 = vst.msk [vmem:[#allocation2] sm:$0xff] %vm780_vm1, %v2125_v32  ;;  %v2126_v34 = vadd.f32 %v2122_v33, %v3299_v29  ;;  %v2816_v29 = vld [vmem:[%s3454_s27] sm:$0xff] (!%p2484_p11)  }
 0xf55   : > { %2700 = vmatpush3.bf16.msra.mxu0 (!%p2484_p11), %v2816_v29 }
 0xf56   : > { %2128 = vst.msk [vmem:[#allocation2 + $0x8] sm:$0xff] %vm780_vm1, %v2126_v34  ;;  %2701 = vmatprep.subr.bf16.mxu0 (!%p2484_p11), %v2906_v41 }
 0xf59   : > { %2702 = vmatpush3.bf16.msra.mxu0 %v2817_v42 }
 0xf5d   : > { %v2136_v7 = vld [vmem:[%s2135_s30] sm:$0x1]  ;;  %v2486_v36 = vld [vmem:[%s2321_s25 + $0x8] sm:$0x1] }
 0xf5e   : > { %v2143_v37 = vrot.slane %v2486_v36, 7 }
 0xf60   : > { %v2146_v26 = vsel %vm2145_vm9, %v2136_v7, %v2143_v37 }
 0xf61   : > { %v2150_v38 = vsel %vm2149_vm10, %v2146_v26, 0.0  ;;  %v2154_v39 = vmul.f32 %v2146_v26, %v2146_v26 }
 0xf62   : > { %2151 = vadd.xlane.f32.xlu0 %v2150_v38 }
 0xf63   : > { %v2155_v40 = vsel %vm2149_vm10, %v2154_v39, 0.0 }
 0xf66   : > { %2156 = vadd.xlane.f32.xlu0 %v2155_v40 }
 0xfef   : > { %v2152_v61 = vpop.xlane.xlu0 %2151 }
 0xff0   : > { %v2153_v43 = vmul.f32 0.03125, %v2152_v61 }
 0xff2   : > { %v2159_v45 = vmul.f32 %v2153_v43, %v2153_v43  ;;  %v2161_v50 = vsub.f32 %v2146_v26, %v2153_v43 }
 0xff3   : > { %v2157_v44 = vpop.xlane.xlu0 %2156 }
 0xff4   : > { %v2158_v46 = vmul.f32 0.03125, %v2157_v44 }
 0xff6   : > { %v2160_v47 = vsub.f32 %v2158_v46, %v2159_v45 }
 0xff8   : > { %v2162_v48 = vadd.f32 1e-05, %v2160_v47 }
 0xffa   : > { %2818 = vrsqrt.f32 %v2162_v48 }
0x1004   : > { %v2819_v52 = vpop.eup %2818 }
0x1005   : > { %v2164_v35 = vmul.f32 %v2819_v52, %v2161_v50 }
0x1007   : > { %v2171_v53 = vmul.f32 %v2487_v31, %v2164_v35 }
0x1009   : > { %v2178_v54 = vadd.f32 %v2488_v51, %v2171_v53 }
0x100b   : > { %v2179_v55 = vpack.c.bf16 %v2178_v54, %v2178_v54 }
0x100d   : > { %2704 = vmatmul.mubr.msk.bf16.vlgmr.msra.gmra.mrb[0].mxu0 %vm780_vm1, %v2179_v55 }
0x10e0   : > { %v2233_v56 = vpop.f32.mrb[0].mxu0 }
0x10e1   : > { %2240 = vst.msk [vmem:[#allocation6] sm:$0x3] %vm2239_vm12, %v2233_v56  ;;  %v2705_v57 = vpop.f32.mrb[1].mxu0 }
0x10e2   : > { %v2236_v58 = vpop.f32.mrb[2].mxu0 }
0x10e3   : > { %v2706_v59 = vpop.f32.mrb[3].mxu0 }
0x10e4 PF: > { %s3457_s14 = sld [smem:[#allocation11_spill]]  ;;  %s2908_s15 = smov [#allocation6]  }
0x10e5   : > { %s2250_s12 = sshll.u32 %s2908_s15, 4  ;;  %s2251_s12 = int_to_ptr.vmem [resolvable:$true] %s2250_s12 }
0x10e6   : > { %s2832_s16 = scalar_lea.vmem %s2251_s12, 32  ;;  %p2839_p2 = scmp.lt.s32.totalorder %s2251_s12, %s2251_s12 }
0x10e7   : > { %p2833_p13 = scmp.ne.s32.totalorder %s2251_s12, %s2832_s16  ;;  %p2840_p3 = scmp.lt.s32.totalorder %s2832_s16, %s2832_s16 }
0x10e9   : > { %p2841_p4 = por %p2840_p3, %p2839_p2 }
0x10ea   : > { %s3458_s21 = sadd.s32 4294967295, %s3457_s14  }
0x10eb   : > { %p3372_p12 = scmp.eq.s32.totalorder %s3458_s21, 1 }
0x10ed   : > { %p2834_p0 = pnand %p2833_p13, %p3372_p12 }
0x10ef   : > { %p2835_p1 = pneg %p2834_p0 }
0x10f1   : > { %p2842_p5 = pnand %p2841_p4, %p2835_p1 }
0x10f3   : > { %2845 = shalt.err (!%p2842_p5)
}
0x10f4   : > { %s3460_s22 = sld [smem:[#allocation22_spill]] }
0x10fa   : > { %s2846_s30 = scalar_lea.hbm %s3460_s22, 32 }
0x10fb   : > { %p2847_p6 = scmp.ne.s32.totalorder %s3460_s22, %s2846_s30  ;;  %p2852_p9 = scmp.lt.u32.totalorder %s2846_s30, %s3460_s22 }
0x10fd   : > { %p2848_p7 = pnand %p2847_p6, %p3372_p12 }
0x10ff   : > { %p2849_p8 = pneg %p2848_p7 }
0x1101   : > { %p2854_p10 = pnand %p2852_p9, %p2849_p8 }
0x1103   : > { %2857 = shalt.err (!%p2854_p10)
}
0x1104   : > { %2708 = dma.vmem_to_hbm [thread:$0]  (%p3372_p12), %s2251_s12, 32, %s3460_s22, [#allocation7]  }
0x1105   : > { %2873 = dma.done.wait (%p3372_p12), [#allocation7], 32  }
0x1106   : > { %2875 = vsyncadd (%p3372_p12), [#allocation7], 4294967264 }
0x1107 PF: > { %s3461_s2 = sld [smem:[#allocation11_spill]]  ;;  %s3462_s19 = sld [smem:[#allocation10_spill]] }
0x1108   : > { %s3463_s1 = sld [smem:[#allocation12_spill]] }
0x110d   : > { %s35_s20 = sadd.s32 1, %s3461_s2  }
0x110e   : > { %p32_p11 = scmp.ge.s32.totalorder %s35_s20, 4  }
0x1110   :  { %34 = sbr.rel (!%p32_p11) target bundleno = 25 (0x19), region = 162 }
0x1117   :  { %2263 = vsyncpa [#allocation7], 1 }
0x1118   :  { %2265 = vsyncpa [#allocation7 + $0x1], 1 }

</bundles_post_ra>
